<compile_context>
chip_gen: v7x
topology: tpu7x:2x2x1
jax: 0.10.0
libtpu: 0.0.40
codegen_flags: <defaults>
</compile_context>

<pallas_src>
import jax
import jax.numpy as jnp
from jax.experimental import pallas as pl
from jax.experimental.pallas import tpu as pltpu

_SELU_SCALE = 1.0507009873554804934193349852946
_SELU_ALPHA = 1.6732632423543772848170429916717

# (in_features, out_features) per Linear layer.
_DIMS = [(7, 2), (2, 6), (6, 2), (2, 5), (5, 2), (2, 2)]


def _round_up(x, m):
    return -(-x // m) * m


def _linear_rows(h_rows, w_ref, b_ref, out_dim, in_dim):
    """Unrolled VPU linear layer.

    h_rows: list of in_dim activations, each (R, 128) f32 (batch on sublanes
            and lanes).
    w_ref:  (out_dim, in_dim) f32 in SMEM (PyTorch weight layout).
    b_ref:  (out_dim,) f32 in SMEM.
    Returns a list of out_dim activations, each (R, 128).
    """
    outs = []
    for j in range(out_dim):
        acc = b_ref[j] + w_ref[j, 0] * h_rows[0]
        for k in range(1, in_dim):
            acc = acc + w_ref[j, k] * h_rows[k]
        outs.append(acc)
    return outs


def _mlp_kernel(x_ref,
                w1_ref, b1_ref, a_ref,
                w2_ref, b2_ref,
                w3_ref, b3_ref,          # w3 already carries the SELU scale
                w4_ref, b4_ref,
                w5_ref, b5_ref,
                w6_ref, b6_ref,
                o_ref):
    # Input tile: (7, R, 128) f32.  Each feature row is a full-occupancy
    # (R, 128) block of vregs.
    h = [x_ref[k] for k in range(7)]

    # Linear(7, 2) + PReLU (single learnable slope)
    h = _linear_rows(h, w1_ref, b1_ref, 2, 7)
    a = a_ref[0]
    h = [jnp.where(v > 0.0, v, a * v) for v in h]

    # Linear(2, 6) + SELU (the SELU scale is folded into w3 host-side)
    h = _linear_rows(h, w2_ref, b2_ref, 6, 2)
    h = [jnp.where(v > 0.0, v,
                   _SELU_ALPHA * (jnp.exp(jnp.minimum(v, 0.0)) - 1.0))
         for v in h]

    # Linear(6, 2) (scaled weights) + ELU(alpha=1)
    h = _linear_rows(h, w3_ref, b3_ref, 2, 6)
    h = [jnp.where(v > 0.0, v, jnp.exp(jnp.minimum(v, 0.0)) - 1.0) for v in h]

    # Linear(2, 5) + Hardshrink(lambda=0.5)
    h = _linear_rows(h, w4_ref, b4_ref, 5, 2)
    h = [jnp.where(jnp.abs(v) > 0.5, v, 0.0) for v in h]

    # Linear(5, 2) + Tanh
    h = _linear_rows(h, w5_ref, b5_ref, 2, 5)
    h = [jnp.tanh(v) for v in h]

    # Linear(2, 2) + direct lane-dense row stores (no concat relayout).
    h = _linear_rows(h, w6_ref, b6_ref, 2, 2)
    o_ref[0] = h[0]
    o_ref[1] = h[1]


def nncov1_forward(x, params, *, tile_rows=512):
    """x: (batch, 7) float32.  params: PyTorch-layout weights (see init_params).

    Returns (batch, 2) float32.  The batch is laid out as (rows, 128) blocks
    (rows padded to a multiple of 8) and processed by a 1-D parallel grid of
    (7, R, 128) tiles.
    """
    batch, feat = x.shape
    assert feat == 7, x.shape

    (w1, b1, prelu_a, w2, b2, w3, b3, w4, b4, w5, b5, w6, b6) = params
    # Fold the SELU scale into the next layer's weights (bias unaffected).
    w3s = (_SELU_SCALE * w3).astype(jnp.float32)

    # Batch -> rows of 128 lanes, padded to a sublane-friendly multiple of 8.
    rows = _round_up(max(batch, 1), 128) // 128
    rows8 = _round_up(rows, 8)

    # Rows per grid step: big by default (amortize per-step pipeline cost),
    # but keep >= 2 steps on large batches so v7x's second TC gets work.
    r_tile = max(8, _round_up(min(tile_rows, rows8), 8))
    if rows8 >= 16:
        r_tile = min(r_tile, _round_up(-(-rows8 // 2), 8))
    padded_rows = _round_up(rows8, r_tile)
    padded = padded_rows * 128
    grid = padded_rows // r_tile

    # Feature-major, zero-padded, (7, padded_rows, 128) layout.
    xt = jnp.pad(x.T.astype(jnp.float32),
                 ((0, 0), (0, padded - batch))).reshape(7, padded_rows, 128)

    kparams = (w1, b1, prelu_a, w2, b2, w3s, b3, w4, b4, w5, b5, w6, b6)
    smem_spec = pl.BlockSpec(memory_space=pltpu.MemorySpace.SMEM)

    out = pl.pallas_call(
        _mlp_kernel,
        out_shape=jax.ShapeDtypeStruct((2, padded_rows, 128), jnp.float32),
        grid=(grid,),
        in_specs=[pl.BlockSpec((7, r_tile, 128), lambda i: (0, i, 0))]
                 + [smem_spec] * len(kparams),
        out_specs=pl.BlockSpec((2, r_tile, 128), lambda i: (0, i, 0)),
        compiler_params=pltpu.CompilerParams(
            dimension_semantics=("parallel",)),
        cost_estimate=pl.CostEstimate(
            flops=124 * padded,
            transcendentals=10 * padded,
            bytes_accessed=36 * padded),
    )(xt, *kparams)

    return out.reshape(2, padded)[:, :batch].T


def _init_linear(key, fan_in, fan_out):
    """PyTorch nn.Linear default init: U(-1/sqrt(fan_in), 1/sqrt(fan_in))."""
    kw, kb = jax.random.split(key)
    bound = float(fan_in) ** -0.5
    # PyTorch layout: weight (out, in), bias (out,)
    w = jax.random.uniform(kw, (fan_out, fan_in), jnp.float32, -bound, bound)
    b = jax.random.uniform(kb, (fan_out,), jnp.float32, -bound, bound)
    return w, b


def init_params(key):
    keys = jax.random.split(key, len(_DIMS))
    layers = [_init_linear(k, i, o) for k, (i, o) in zip(keys, _DIMS)]
    (w1, b1), (w2, b2), (w3, b3), (w4, b4), (w5, b5), (w6, b6) = layers
    prelu_a = jnp.full((1,), 0.25, jnp.float32)  # nn.PReLU() default slope
    return (w1, b1, prelu_a, w2, b2, w3, b3, w4, b4, w5, b5, w6, b6)


def _reference(x, params):
    """Pure-JAX reference of the same forward pass (for sanity checking)."""
    (w1, b1, a, w2, b2, w3, b3, w4, b4, w5, b5, w6, b6) = params
    h = x @ w1.T + b1
    h = jnp.where(h > 0, h, a[0] * h)
    h = h @ w2.T + b2
    h = _SELU_SCALE * jnp.where(
        h > 0, h, _SELU_ALPHA * (jnp.exp(jnp.minimum(h, 0.0)) - 1.0))
    h = h @ w3.T + b3
    h = jnp.where(h > 0, h, jnp.exp(jnp.minimum(h, 0.0)) - 1.0)
    h = h @ w4.T + b4
    h = jnp.where(jnp.abs(h) > 0.5, h, 0.0)
    h = h @ w5.T + b5
    h = jnp.tanh(h)
    return h @ w6.T + b6


if __name__ == "__main__":
    key = jax.random.PRNGKey(0)
    k_params, k_x1, k_x2 = jax.random.split(key, 3)
    params = init_params(k_params)

    # Small case matching the module's natural input shape.
    x_small = jax.random.normal(k_x1, (8, 7), jnp.float32)
    out_small = jax.block_until_ready(nncov1_forward(x_small, params))
    ref_small = _reference(x_small, params)
    assert out_small.shape == (8, 2), out_small.shape
    assert jnp.allclose(out_small, ref_small, atol=1e-5, rtol=1e-5), \
        "small-batch mismatch vs JAX reference"

    # Larger, non-multiple batch: exercises the multi-step parallel grid
    # (default tile -> 2 steps; tiny tile -> 3 steps) and the row padding.
    x_big = jax.random.normal(k_x2, (2600, 7), jnp.float32)
    ref_big = _reference(x_big, params)

    out_big = jax.block_until_ready(nncov1_forward(x_big, params))
    assert out_big.shape == (2600, 2), out_big.shape
    assert jnp.allclose(out_big, ref_big, atol=1e-5, rtol=1e-5), \
        "tiled-batch (default tile) mismatch vs JAX reference"

    out_big_small_tile = jax.block_until_ready(
        nncov1_forward(x_big, params, tile_rows=8))
    assert jnp.allclose(out_big_small_tile, ref_big, atol=1e-5, rtol=1e-5), \
        "tiled-batch (small tile) mismatch vs JAX reference"

    print("KERNEL_OK")
</pallas_src>

<mosaic_0001>
module attributes {stable_mosaic.version = 11 : i64} {
  func.func @_mlp_kernel(%arg0: i32, %arg1: memref<7x8x128xf32, #tpu.memory_space<vmem>>, %arg2: memref<2x7xf32, #tpu.memory_space<smem>>, %arg3: memref<2xf32, #tpu.memory_space<smem>>, %arg4: memref<1xf32, #tpu.memory_space<smem>>, %arg5: memref<6x2xf32, #tpu.memory_space<smem>>, %arg6: memref<6xf32, #tpu.memory_space<smem>>, %arg7: memref<2x6xf32, #tpu.memory_space<smem>>, %arg8: memref<2xf32, #tpu.memory_space<smem>>, %arg9: memref<5x2xf32, #tpu.memory_space<smem>>, %arg10: memref<5xf32, #tpu.memory_space<smem>>, %arg11: memref<2x5xf32, #tpu.memory_space<smem>>, %arg12: memref<2xf32, #tpu.memory_space<smem>>, %arg13: memref<2x2xf32, #tpu.memory_space<smem>>, %arg14: memref<2xf32, #tpu.memory_space<smem>>, %arg15: memref<2x8x128xf32, #tpu.memory_space<vmem>>) attributes {dimension_semantics = [#tpu.dimension_semantics<parallel>], iteration_bounds = array<i64: 1>, scalar_prefetch = 0 : i64, scratch_operands = 0 : i64, tpu.core_type = #tpu.core_type<tc>, window_params = [{transform_indices = @transform_0, window_bounds = array<i64: 7, 8, 128>}, {transform_indices = @transform_1, window_bounds = array<i64: 2, 7>}, {transform_indices = @transform_2, window_bounds = array<i64: 2>}, {transform_indices = @transform_3, window_bounds = array<i64: 1>}, {transform_indices = @transform_4, window_bounds = array<i64: 6, 2>}, {transform_indices = @transform_5, window_bounds = array<i64: 6>}, {transform_indices = @transform_6, window_bounds = array<i64: 2, 6>}, {transform_indices = @transform_7, window_bounds = array<i64: 2>}, {transform_indices = @transform_8, window_bounds = array<i64: 5, 2>}, {transform_indices = @transform_9, window_bounds = array<i64: 5>}, {transform_indices = @transform_10, window_bounds = array<i64: 2, 5>}, {transform_indices = @transform_11, window_bounds = array<i64: 2>}, {transform_indices = @transform_12, window_bounds = array<i64: 2, 2>}, {transform_indices = @transform_13, window_bounds = array<i64: 2>}, {transform_indices = @transform_14, window_bounds = array<i64: 2, 8, 128>}]} {
    %c0 = arith.constant 0 : index
    %c0_0 = arith.constant 0 : index
    %c0_1 = arith.constant 0 : index
    %0 = vector.load %arg1[%c0, %c0_0, %c0_1] : memref<7x8x128xf32, #tpu.memory_space<vmem>>, vector<1x8x128xf32>
    %1 = vector.shape_cast %0 : vector<1x8x128xf32> to vector<8x128xf32>
    %c1 = arith.constant 1 : index
    %c0_2 = arith.constant 0 : index
    %c0_3 = arith.constant 0 : index
    %2 = vector.load %arg1[%c1, %c0_2, %c0_3] : memref<7x8x128xf32, #tpu.memory_space<vmem>>, vector<1x8x128xf32>
    %3 = vector.shape_cast %2 : vector<1x8x128xf32> to vector<8x128xf32>
    %c2 = arith.constant 2 : index
    %c0_4 = arith.constant 0 : index
    %c0_5 = arith.constant 0 : index
    %4 = vector.load %arg1[%c2, %c0_4, %c0_5] : memref<7x8x128xf32, #tpu.memory_space<vmem>>, vector<1x8x128xf32>
    %5 = vector.shape_cast %4 : vector<1x8x128xf32> to vector<8x128xf32>
    %c3 = arith.constant 3 : index
    %c0_6 = arith.constant 0 : index
    %c0_7 = arith.constant 0 : index
    %6 = vector.load %arg1[%c3, %c0_6, %c0_7] : memref<7x8x128xf32, #tpu.memory_space<vmem>>, vector<1x8x128xf32>
    %7 = vector.shape_cast %6 : vector<1x8x128xf32> to vector<8x128xf32>
    %c4 = arith.constant 4 : index
    %c0_8 = arith.constant 0 : index
    %c0_9 = arith.constant 0 : index
    %8 = vector.load %arg1[%c4, %c0_8, %c0_9] : memref<7x8x128xf32, #tpu.memory_space<vmem>>, vector<1x8x128xf32>
    %9 = vector.shape_cast %8 : vector<1x8x128xf32> to vector<8x128xf32>
    %c5 = arith.constant 5 : index
    %c0_10 = arith.constant 0 : index
    %c0_11 = arith.constant 0 : index
    %10 = vector.load %arg1[%c5, %c0_10, %c0_11] : memref<7x8x128xf32, #tpu.memory_space<vmem>>, vector<1x8x128xf32>
    %11 = vector.shape_cast %10 : vector<1x8x128xf32> to vector<8x128xf32>
    %c6 = arith.constant 6 : index
    %c0_12 = arith.constant 0 : index
    %c0_13 = arith.constant 0 : index
    %12 = vector.load %arg1[%c6, %c0_12, %c0_13] : memref<7x8x128xf32, #tpu.memory_space<vmem>>, vector<1x8x128xf32>
    %13 = vector.shape_cast %12 : vector<1x8x128xf32> to vector<8x128xf32>
    %c0_14 = arith.constant 0 : index
    %14 = memref.load %arg3[%c0_14] : memref<2xf32, #tpu.memory_space<smem>>
    %c0_15 = arith.constant 0 : index
    %c0_16 = arith.constant 0 : index
    %15 = memref.load %arg2[%c0_15, %c0_16] : memref<2x7xf32, #tpu.memory_space<smem>>
    %16 = vector.broadcast %15 : f32 to vector<8x128xf32>
    %17 = arith.mulf %16, %1 : vector<8x128xf32>
    %18 = vector.broadcast %14 : f32 to vector<8x128xf32>
    %19 = arith.addf %18, %17 : vector<8x128xf32>
    %c0_17 = arith.constant 0 : index
    %c1_18 = arith.constant 1 : index
    %20 = memref.load %arg2[%c0_17, %c1_18] : memref<2x7xf32, #tpu.memory_space<smem>>
    %21 = vector.broadcast %20 : f32 to vector<8x128xf32>
    %22 = arith.mulf %21, %3 : vector<8x128xf32>
    %23 = arith.addf %19, %22 : vector<8x128xf32>
    %c0_19 = arith.constant 0 : index
    %c2_20 = arith.constant 2 : index
    %24 = memref.load %arg2[%c0_19, %c2_20] : memref<2x7xf32, #tpu.memory_space<smem>>
    %25 = vector.broadcast %24 : f32 to vector<8x128xf32>
    %26 = arith.mulf %25, %5 : vector<8x128xf32>
    %27 = arith.addf %23, %26 : vector<8x128xf32>
    %c0_21 = arith.constant 0 : index
    %c3_22 = arith.constant 3 : index
    %28 = memref.load %arg2[%c0_21, %c3_22] : memref<2x7xf32, #tpu.memory_space<smem>>
    %29 = vector.broadcast %28 : f32 to vector<8x128xf32>
    %30 = arith.mulf %29, %7 : vector<8x128xf32>
    %31 = arith.addf %27, %30 : vector<8x128xf32>
    %c0_23 = arith.constant 0 : index
    %c4_24 = arith.constant 4 : index
    %32 = memref.load %arg2[%c0_23, %c4_24] : memref<2x7xf32, #tpu.memory_space<smem>>
    %33 = vector.broadcast %32 : f32 to vector<8x128xf32>
    %34 = arith.mulf %33, %9 : vector<8x128xf32>
    %35 = arith.addf %31, %34 : vector<8x128xf32>
    %c0_25 = arith.constant 0 : index
    %c5_26 = arith.constant 5 : index
    %36 = memref.load %arg2[%c0_25, %c5_26] : memref<2x7xf32, #tpu.memory_space<smem>>
    %37 = vector.broadcast %36 : f32 to vector<8x128xf32>
    %38 = arith.mulf %37, %11 : vector<8x128xf32>
    %39 = arith.addf %35, %38 : vector<8x128xf32>
    %c0_27 = arith.constant 0 : index
    %c6_28 = arith.constant 6 : index
    %40 = memref.load %arg2[%c0_27, %c6_28] : memref<2x7xf32, #tpu.memory_space<smem>>
    %41 = vector.broadcast %40 : f32 to vector<8x128xf32>
    %42 = arith.mulf %41, %13 : vector<8x128xf32>
    %43 = arith.addf %39, %42 : vector<8x128xf32>
    %c1_29 = arith.constant 1 : index
    %44 = memref.load %arg3[%c1_29] : memref<2xf32, #tpu.memory_space<smem>>
    %c1_30 = arith.constant 1 : index
    %c0_31 = arith.constant 0 : index
    %45 = memref.load %arg2[%c1_30, %c0_31] : memref<2x7xf32, #tpu.memory_space<smem>>
    %46 = vector.broadcast %45 : f32 to vector<8x128xf32>
    %47 = arith.mulf %46, %1 : vector<8x128xf32>
    %48 = vector.broadcast %44 : f32 to vector<8x128xf32>
    %49 = arith.addf %48, %47 : vector<8x128xf32>
    %c1_32 = arith.constant 1 : index
    %c1_33 = arith.constant 1 : index
    %50 = memref.load %arg2[%c1_32, %c1_33] : memref<2x7xf32, #tpu.memory_space<smem>>
    %51 = vector.broadcast %50 : f32 to vector<8x128xf32>
    %52 = arith.mulf %51, %3 : vector<8x128xf32>
    %53 = arith.addf %49, %52 : vector<8x128xf32>
    %c1_34 = arith.constant 1 : index
    %c2_35 = arith.constant 2 : index
    %54 = memref.load %arg2[%c1_34, %c2_35] : memref<2x7xf32, #tpu.memory_space<smem>>
    %55 = vector.broadcast %54 : f32 to vector<8x128xf32>
    %56 = arith.mulf %55, %5 : vector<8x128xf32>
    %57 = arith.addf %53, %56 : vector<8x128xf32>
    %c1_36 = arith.constant 1 : index
    %c3_37 = arith.constant 3 : index
    %58 = memref.load %arg2[%c1_36, %c3_37] : memref<2x7xf32, #tpu.memory_space<smem>>
    %59 = vector.broadcast %58 : f32 to vector<8x128xf32>
    %60 = arith.mulf %59, %7 : vector<8x128xf32>
    %61 = arith.addf %57, %60 : vector<8x128xf32>
    %c1_38 = arith.constant 1 : index
    %c4_39 = arith.constant 4 : index
    %62 = memref.load %arg2[%c1_38, %c4_39] : memref<2x7xf32, #tpu.memory_space<smem>>
    %63 = vector.broadcast %62 : f32 to vector<8x128xf32>
    %64 = arith.mulf %63, %9 : vector<8x128xf32>
    %65 = arith.addf %61, %64 : vector<8x128xf32>
    %c1_40 = arith.constant 1 : index
    %c5_41 = arith.constant 5 : index
    %66 = memref.load %arg2[%c1_40, %c5_41] : memref<2x7xf32, #tpu.memory_space<smem>>
    %67 = vector.broadcast %66 : f32 to vector<8x128xf32>
    %68 = arith.mulf %67, %11 : vector<8x128xf32>
    %69 = arith.addf %65, %68 : vector<8x128xf32>
    %c1_42 = arith.constant 1 : index
    %c6_43 = arith.constant 6 : index
    %70 = memref.load %arg2[%c1_42, %c6_43] : memref<2x7xf32, #tpu.memory_space<smem>>
    %71 = vector.broadcast %70 : f32 to vector<8x128xf32>
    %72 = arith.mulf %71, %13 : vector<8x128xf32>
    %73 = arith.addf %69, %72 : vector<8x128xf32>
    %c0_44 = arith.constant 0 : index
    %74 = memref.load %arg4[%c0_44] : memref<1xf32, #tpu.memory_space<smem>>
    %cst = arith.constant 0.000000e+00 : f32
    %75 = vector.broadcast %cst : f32 to vector<8x128xf32>
    %76 = arith.cmpf ogt, %43, %75 : vector<8x128xf32>
    %77 = vector.broadcast %74 : f32 to vector<8x128xf32>
    %78 = arith.mulf %77, %43 : vector<8x128xf32>
    %79 = arith.select %76, %43, %78 : vector<8x128xi1>, vector<8x128xf32>
    %cst_45 = arith.constant 0.000000e+00 : f32
    %80 = vector.broadcast %cst_45 : f32 to vector<8x128xf32>
    %81 = arith.cmpf ogt, %73, %80 : vector<8x128xf32>
    %82 = vector.broadcast %74 : f32 to vector<8x128xf32>
    %83 = arith.mulf %82, %73 : vector<8x128xf32>
    %84 = arith.select %81, %73, %83 : vector<8x128xi1>, vector<8x128xf32>
    %c0_46 = arith.constant 0 : index
    %85 = memref.load %arg6[%c0_46] : memref<6xf32, #tpu.memory_space<smem>>
    %c0_47 = arith.constant 0 : index
    %c0_48 = arith.constant 0 : index
    %86 = memref.load %arg5[%c0_47, %c0_48] : memref<6x2xf32, #tpu.memory_space<smem>>
    %87 = vector.broadcast %86 : f32 to vector<8x128xf32>
    %88 = arith.mulf %87, %79 : vector<8x128xf32>
    %89 = vector.broadcast %85 : f32 to vector<8x128xf32>
    %90 = arith.addf %89, %88 : vector<8x128xf32>
    %c0_49 = arith.constant 0 : index
    %c1_50 = arith.constant 1 : index
    %91 = memref.load %arg5[%c0_49, %c1_50] : memref<6x2xf32, #tpu.memory_space<smem>>
    %92 = vector.broadcast %91 : f32 to vector<8x128xf32>
    %93 = arith.mulf %92, %84 : vector<8x128xf32>
    %94 = arith.addf %90, %93 : vector<8x128xf32>
    %c1_51 = arith.constant 1 : index
    %95 = memref.load %arg6[%c1_51] : memref<6xf32, #tpu.memory_space<smem>>
    %c1_52 = arith.constant 1 : index
    %c0_53 = arith.constant 0 : index
    %96 = memref.load %arg5[%c1_52, %c0_53] : memref<6x2xf32, #tpu.memory_space<smem>>
    %97 = vector.broadcast %96 : f32 to vector<8x128xf32>
    %98 = arith.mulf %97, %79 : vector<8x128xf32>
    %99 = vector.broadcast %95 : f32 to vector<8x128xf32>
    %100 = arith.addf %99, %98 : vector<8x128xf32>
    %c1_54 = arith.constant 1 : index
    %c1_55 = arith.constant 1 : index
    %101 = memref.load %arg5[%c1_54, %c1_55] : memref<6x2xf32, #tpu.memory_space<smem>>
    %102 = vector.broadcast %101 : f32 to vector<8x128xf32>
    %103 = arith.mulf %102, %84 : vector<8x128xf32>
    %104 = arith.addf %100, %103 : vector<8x128xf32>
    %c2_56 = arith.constant 2 : index
    %105 = memref.load %arg6[%c2_56] : memref<6xf32, #tpu.memory_space<smem>>
    %c2_57 = arith.constant 2 : index
    %c0_58 = arith.constant 0 : index
    %106 = memref.load %arg5[%c2_57, %c0_58] : memref<6x2xf32, #tpu.memory_space<smem>>
    %107 = vector.broadcast %106 : f32 to vector<8x128xf32>
    %108 = arith.mulf %107, %79 : vector<8x128xf32>
    %109 = vector.broadcast %105 : f32 to vector<8x128xf32>
    %110 = arith.addf %109, %108 : vector<8x128xf32>
    %c2_59 = arith.constant 2 : index
    %c1_60 = arith.constant 1 : index
    %111 = memref.load %arg5[%c2_59, %c1_60] : memref<6x2xf32, #tpu.memory_space<smem>>
    %112 = vector.broadcast %111 : f32 to vector<8x128xf32>
    %113 = arith.mulf %112, %84 : vector<8x128xf32>
    %114 = arith.addf %110, %113 : vector<8x128xf32>
    %c3_61 = arith.constant 3 : index
    %115 = memref.load %arg6[%c3_61] : memref<6xf32, #tpu.memory_space<smem>>
    %c3_62 = arith.constant 3 : index
    %c0_63 = arith.constant 0 : index
    %116 = memref.load %arg5[%c3_62, %c0_63] : memref<6x2xf32, #tpu.memory_space<smem>>
    %117 = vector.broadcast %116 : f32 to vector<8x128xf32>
    %118 = arith.mulf %117, %79 : vector<8x128xf32>
    %119 = vector.broadcast %115 : f32 to vector<8x128xf32>
    %120 = arith.addf %119, %118 : vector<8x128xf32>
    %c3_64 = arith.constant 3 : index
    %c1_65 = arith.constant 1 : index
    %121 = memref.load %arg5[%c3_64, %c1_65] : memref<6x2xf32, #tpu.memory_space<smem>>
    %122 = vector.broadcast %121 : f32 to vector<8x128xf32>
    %123 = arith.mulf %122, %84 : vector<8x128xf32>
    %124 = arith.addf %120, %123 : vector<8x128xf32>
    %c4_66 = arith.constant 4 : index
    %125 = memref.load %arg6[%c4_66] : memref<6xf32, #tpu.memory_space<smem>>
    %c4_67 = arith.constant 4 : index
    %c0_68 = arith.constant 0 : index
    %126 = memref.load %arg5[%c4_67, %c0_68] : memref<6x2xf32, #tpu.memory_space<smem>>
    %127 = vector.broadcast %126 : f32 to vector<8x128xf32>
    %128 = arith.mulf %127, %79 : vector<8x128xf32>
    %129 = vector.broadcast %125 : f32 to vector<8x128xf32>
    %130 = arith.addf %129, %128 : vector<8x128xf32>
    %c4_69 = arith.constant 4 : index
    %c1_70 = arith.constant 1 : index
    %131 = memref.load %arg5[%c4_69, %c1_70] : memref<6x2xf32, #tpu.memory_space<smem>>
    %132 = vector.broadcast %131 : f32 to vector<8x128xf32>
    %133 = arith.mulf %132, %84 : vector<8x128xf32>
    %134 = arith.addf %130, %133 : vector<8x128xf32>
    %c5_71 = arith.constant 5 : index
    %135 = memref.load %arg6[%c5_71] : memref<6xf32, #tpu.memory_space<smem>>
    %c5_72 = arith.constant 5 : index
    %c0_73 = arith.constant 0 : index
    %136 = memref.load %arg5[%c5_72, %c0_73] : memref<6x2xf32, #tpu.memory_space<smem>>
    %137 = vector.broadcast %136 : f32 to vector<8x128xf32>
    %138 = arith.mulf %137, %79 : vector<8x128xf32>
    %139 = vector.broadcast %135 : f32 to vector<8x128xf32>
    %140 = arith.addf %139, %138 : vector<8x128xf32>
    %c5_74 = arith.constant 5 : index
    %c1_75 = arith.constant 1 : index
    %141 = memref.load %arg5[%c5_74, %c1_75] : memref<6x2xf32, #tpu.memory_space<smem>>
    %142 = vector.broadcast %141 : f32 to vector<8x128xf32>
    %143 = arith.mulf %142, %84 : vector<8x128xf32>
    %144 = arith.addf %140, %143 : vector<8x128xf32>
    %cst_76 = arith.constant 0.000000e+00 : f32
    %145 = vector.broadcast %cst_76 : f32 to vector<8x128xf32>
    %146 = arith.cmpf ogt, %94, %145 : vector<8x128xf32>
    %cst_77 = arith.constant 0.000000e+00 : f32
    %147 = vector.broadcast %cst_77 : f32 to vector<8x128xf32>
    %148 = arith.minimumf %94, %147 : vector<8x128xf32>
    %149 = math.exp %148 : vector<8x128xf32>
    %cst_78 = arith.constant 1.000000e+00 : f32
    %150 = vector.broadcast %cst_78 : f32 to vector<8x128xf32>
    %151 = arith.subf %149, %150 : vector<8x128xf32>
    %cst_79 = arith.constant 1.67326319 : f32
    %152 = vector.broadcast %cst_79 : f32 to vector<8x128xf32>
    %153 = arith.mulf %152, %151 : vector<8x128xf32>
    %154 = arith.select %146, %94, %153 : vector<8x128xi1>, vector<8x128xf32>
    %cst_80 = arith.constant 0.000000e+00 : f32
    %155 = vector.broadcast %cst_80 : f32 to vector<8x128xf32>
    %156 = arith.cmpf ogt, %104, %155 : vector<8x128xf32>
    %cst_81 = arith.constant 0.000000e+00 : f32
    %157 = vector.broadcast %cst_81 : f32 to vector<8x128xf32>
    %158 = arith.minimumf %104, %157 : vector<8x128xf32>
    %159 = math.exp %158 : vector<8x128xf32>
    %cst_82 = arith.constant 1.000000e+00 : f32
    %160 = vector.broadcast %cst_82 : f32 to vector<8x128xf32>
    %161 = arith.subf %159, %160 : vector<8x128xf32>
    %cst_83 = arith.constant 1.67326319 : f32
    %162 = vector.broadcast %cst_83 : f32 to vector<8x128xf32>
    %163 = arith.mulf %162, %161 : vector<8x128xf32>
    %164 = arith.select %156, %104, %163 : vector<8x128xi1>, vector<8x128xf32>
    %cst_84 = arith.constant 0.000000e+00 : f32
    %165 = vector.broadcast %cst_84 : f32 to vector<8x128xf32>
    %166 = arith.cmpf ogt, %114, %165 : vector<8x128xf32>
    %cst_85 = arith.constant 0.000000e+00 : f32
    %167 = vector.broadcast %cst_85 : f32 to vector<8x128xf32>
    %168 = arith.minimumf %114, %167 : vector<8x128xf32>
    %169 = math.exp %168 : vector<8x128xf32>
    %cst_86 = arith.constant 1.000000e+00 : f32
    %170 = vector.broadcast %cst_86 : f32 to vector<8x128xf32>
    %171 = arith.subf %169, %170 : vector<8x128xf32>
    %cst_87 = arith.constant 1.67326319 : f32
    %172 = vector.broadcast %cst_87 : f32 to vector<8x128xf32>
    %173 = arith.mulf %172, %171 : vector<8x128xf32>
    %174 = arith.select %166, %114, %173 : vector<8x128xi1>, vector<8x128xf32>
    %cst_88 = arith.constant 0.000000e+00 : f32
    %175 = vector.broadcast %cst_88 : f32 to vector<8x128xf32>
    %176 = arith.cmpf ogt, %124, %175 : vector<8x128xf32>
    %cst_89 = arith.constant 0.000000e+00 : f32
    %177 = vector.broadcast %cst_89 : f32 to vector<8x128xf32>
    %178 = arith.minimumf %124, %177 : vector<8x128xf32>
    %179 = math.exp %178 : vector<8x128xf32>
    %cst_90 = arith.constant 1.000000e+00 : f32
    %180 = vector.broadcast %cst_90 : f32 to vector<8x128xf32>
    %181 = arith.subf %179, %180 : vector<8x128xf32>
    %cst_91 = arith.constant 1.67326319 : f32
    %182 = vector.broadcast %cst_91 : f32 to vector<8x128xf32>
    %183 = arith.mulf %182, %181 : vector<8x128xf32>
    %184 = arith.select %176, %124, %183 : vector<8x128xi1>, vector<8x128xf32>
    %cst_92 = arith.constant 0.000000e+00 : f32
    %185 = vector.broadcast %cst_92 : f32 to vector<8x128xf32>
    %186 = arith.cmpf ogt, %134, %185 : vector<8x128xf32>
    %cst_93 = arith.constant 0.000000e+00 : f32
    %187 = vector.broadcast %cst_93 : f32 to vector<8x128xf32>
    %188 = arith.minimumf %134, %187 : vector<8x128xf32>
    %189 = math.exp %188 : vector<8x128xf32>
    %cst_94 = arith.constant 1.000000e+00 : f32
    %190 = vector.broadcast %cst_94 : f32 to vector<8x128xf32>
    %191 = arith.subf %189, %190 : vector<8x128xf32>
    %cst_95 = arith.constant 1.67326319 : f32
    %192 = vector.broadcast %cst_95 : f32 to vector<8x128xf32>
    %193 = arith.mulf %192, %191 : vector<8x128xf32>
    %194 = arith.select %186, %134, %193 : vector<8x128xi1>, vector<8x128xf32>
    %cst_96 = arith.constant 0.000000e+00 : f32
    %195 = vector.broadcast %cst_96 : f32 to vector<8x128xf32>
    %196 = arith.cmpf ogt, %144, %195 : vector<8x128xf32>
    %cst_97 = arith.constant 0.000000e+00 : f32
    %197 = vector.broadcast %cst_97 : f32 to vector<8x128xf32>
    %198 = arith.minimumf %144, %197 : vector<8x128xf32>
    %199 = math.exp %198 : vector<8x128xf32>
    %cst_98 = arith.constant 1.000000e+00 : f32
    %200 = vector.broadcast %cst_98 : f32 to vector<8x128xf32>
    %201 = arith.subf %199, %200 : vector<8x128xf32>
    %cst_99 = arith.constant 1.67326319 : f32
    %202 = vector.broadcast %cst_99 : f32 to vector<8x128xf32>
    %203 = arith.mulf %202, %201 : vector<8x128xf32>
    %204 = arith.select %196, %144, %203 : vector<8x128xi1>, vector<8x128xf32>
    %c0_100 = arith.constant 0 : index
    %205 = memref.load %arg8[%c0_100] : memref<2xf32, #tpu.memory_space<smem>>
    %c0_101 = arith.constant 0 : index
    %c0_102 = arith.constant 0 : index
    %206 = memref.load %arg7[%c0_101, %c0_102] : memref<2x6xf32, #tpu.memory_space<smem>>
    %207 = vector.broadcast %206 : f32 to vector<8x128xf32>
    %208 = arith.mulf %207, %154 : vector<8x128xf32>
    %209 = vector.broadcast %205 : f32 to vector<8x128xf32>
    %210 = arith.addf %209, %208 : vector<8x128xf32>
    %c0_103 = arith.constant 0 : index
    %c1_104 = arith.constant 1 : index
    %211 = memref.load %arg7[%c0_103, %c1_104] : memref<2x6xf32, #tpu.memory_space<smem>>
    %212 = vector.broadcast %211 : f32 to vector<8x128xf32>
    %213 = arith.mulf %212, %164 : vector<8x128xf32>
    %214 = arith.addf %210, %213 : vector<8x128xf32>
    %c0_105 = arith.constant 0 : index
    %c2_106 = arith.constant 2 : index
    %215 = memref.load %arg7[%c0_105, %c2_106] : memref<2x6xf32, #tpu.memory_space<smem>>
    %216 = vector.broadcast %215 : f32 to vector<8x128xf32>
    %217 = arith.mulf %216, %174 : vector<8x128xf32>
    %218 = arith.addf %214, %217 : vector<8x128xf32>
    %c0_107 = arith.constant 0 : index
    %c3_108 = arith.constant 3 : index
    %219 = memref.load %arg7[%c0_107, %c3_108] : memref<2x6xf32, #tpu.memory_space<smem>>
    %220 = vector.broadcast %219 : f32 to vector<8x128xf32>
    %221 = arith.mulf %220, %184 : vector<8x128xf32>
    %222 = arith.addf %218, %221 : vector<8x128xf32>
    %c0_109 = arith.constant 0 : index
    %c4_110 = arith.constant 4 : index
    %223 = memref.load %arg7[%c0_109, %c4_110] : memref<2x6xf32, #tpu.memory_space<smem>>
    %224 = vector.broadcast %223 : f32 to vector<8x128xf32>
    %225 = arith.mulf %224, %194 : vector<8x128xf32>
    %226 = arith.addf %222, %225 : vector<8x128xf32>
    %c0_111 = arith.constant 0 : index
    %c5_112 = arith.constant 5 : index
    %227 = memref.load %arg7[%c0_111, %c5_112] : memref<2x6xf32, #tpu.memory_space<smem>>
    %228 = vector.broadcast %227 : f32 to vector<8x128xf32>
    %229 = arith.mulf %228, %204 : vector<8x128xf32>
    %230 = arith.addf %226, %229 : vector<8x128xf32>
    %c1_113 = arith.constant 1 : index
    %231 = memref.load %arg8[%c1_113] : memref<2xf32, #tpu.memory_space<smem>>
    %c1_114 = arith.constant 1 : index
    %c0_115 = arith.constant 0 : index
    %232 = memref.load %arg7[%c1_114, %c0_115] : memref<2x6xf32, #tpu.memory_space<smem>>
    %233 = vector.broadcast %232 : f32 to vector<8x128xf32>
    %234 = arith.mulf %233, %154 : vector<8x128xf32>
    %235 = vector.broadcast %231 : f32 to vector<8x128xf32>
    %236 = arith.addf %235, %234 : vector<8x128xf32>
    %c1_116 = arith.constant 1 : index
    %c1_117 = arith.constant 1 : index
    %237 = memref.load %arg7[%c1_116, %c1_117] : memref<2x6xf32, #tpu.memory_space<smem>>
    %238 = vector.broadcast %237 : f32 to vector<8x128xf32>
    %239 = arith.mulf %238, %164 : vector<8x128xf32>
    %240 = arith.addf %236, %239 : vector<8x128xf32>
    %c1_118 = arith.constant 1 : index
    %c2_119 = arith.constant 2 : index
    %241 = memref.load %arg7[%c1_118, %c2_119] : memref<2x6xf32, #tpu.memory_space<smem>>
    %242 = vector.broadcast %241 : f32 to vector<8x128xf32>
    %243 = arith.mulf %242, %174 : vector<8x128xf32>
    %244 = arith.addf %240, %243 : vector<8x128xf32>
    %c1_120 = arith.constant 1 : index
    %c3_121 = arith.constant 3 : index
    %245 = memref.load %arg7[%c1_120, %c3_121] : memref<2x6xf32, #tpu.memory_space<smem>>
    %246 = vector.broadcast %245 : f32 to vector<8x128xf32>
    %247 = arith.mulf %246, %184 : vector<8x128xf32>
    %248 = arith.addf %244, %247 : vector<8x128xf32>
    %c1_122 = arith.constant 1 : index
    %c4_123 = arith.constant 4 : index
    %249 = memref.load %arg7[%c1_122, %c4_123] : memref<2x6xf32, #tpu.memory_space<smem>>
    %250 = vector.broadcast %249 : f32 to vector<8x128xf32>
    %251 = arith.mulf %250, %194 : vector<8x128xf32>
    %252 = arith.addf %248, %251 : vector<8x128xf32>
    %c1_124 = arith.constant 1 : index
    %c5_125 = arith.constant 5 : index
    %253 = memref.load %arg7[%c1_124, %c5_125] : memref<2x6xf32, #tpu.memory_space<smem>>
    %254 = vector.broadcast %253 : f32 to vector<8x128xf32>
    %255 = arith.mulf %254, %204 : vector<8x128xf32>
    %256 = arith.addf %252, %255 : vector<8x128xf32>
    %cst_126 = arith.constant 0.000000e+00 : f32
    %257 = vector.broadcast %cst_126 : f32 to vector<8x128xf32>
    %258 = arith.cmpf ogt, %230, %257 : vector<8x128xf32>
    %cst_127 = arith.constant 0.000000e+00 : f32
    %259 = vector.broadcast %cst_127 : f32 to vector<8x128xf32>
    %260 = arith.minimumf %230, %259 : vector<8x128xf32>
    %261 = math.exp %260 : vector<8x128xf32>
    %cst_128 = arith.constant 1.000000e+00 : f32
    %262 = vector.broadcast %cst_128 : f32 to vector<8x128xf32>
    %263 = arith.subf %261, %262 : vector<8x128xf32>
    %264 = arith.select %258, %230, %263 : vector<8x128xi1>, vector<8x128xf32>
    %cst_129 = arith.constant 0.000000e+00 : f32
    %265 = vector.broadcast %cst_129 : f32 to vector<8x128xf32>
    %266 = arith.cmpf ogt, %256, %265 : vector<8x128xf32>
    %cst_130 = arith.constant 0.000000e+00 : f32
    %267 = vector.broadcast %cst_130 : f32 to vector<8x128xf32>
    %268 = arith.minimumf %256, %267 : vector<8x128xf32>
    %269 = math.exp %268 : vector<8x128xf32>
    %cst_131 = arith.constant 1.000000e+00 : f32
    %270 = vector.broadcast %cst_131 : f32 to vector<8x128xf32>
    %271 = arith.subf %269, %270 : vector<8x128xf32>
    %272 = arith.select %266, %256, %271 : vector<8x128xi1>, vector<8x128xf32>
    %c0_132 = arith.constant 0 : index
    %273 = memref.load %arg10[%c0_132] : memref<5xf32, #tpu.memory_space<smem>>
    %c0_133 = arith.constant 0 : index
    %c0_134 = arith.constant 0 : index
    %274 = memref.load %arg9[%c0_133, %c0_134] : memref<5x2xf32, #tpu.memory_space<smem>>
    %275 = vector.broadcast %274 : f32 to vector<8x128xf32>
    %276 = arith.mulf %275, %264 : vector<8x128xf32>
    %277 = vector.broadcast %273 : f32 to vector<8x128xf32>
    %278 = arith.addf %277, %276 : vector<8x128xf32>
    %c0_135 = arith.constant 0 : index
    %c1_136 = arith.constant 1 : index
    %279 = memref.load %arg9[%c0_135, %c1_136] : memref<5x2xf32, #tpu.memory_space<smem>>
    %280 = vector.broadcast %279 : f32 to vector<8x128xf32>
    %281 = arith.mulf %280, %272 : vector<8x128xf32>
    %282 = arith.addf %278, %281 : vector<8x128xf32>
    %c1_137 = arith.constant 1 : index
    %283 = memref.load %arg10[%c1_137] : memref<5xf32, #tpu.memory_space<smem>>
    %c1_138 = arith.constant 1 : index
    %c0_139 = arith.constant 0 : index
    %284 = memref.load %arg9[%c1_138, %c0_139] : memref<5x2xf32, #tpu.memory_space<smem>>
    %285 = vector.broadcast %284 : f32 to vector<8x128xf32>
    %286 = arith.mulf %285, %264 : vector<8x128xf32>
    %287 = vector.broadcast %283 : f32 to vector<8x128xf32>
    %288 = arith.addf %287, %286 : vector<8x128xf32>
    %c1_140 = arith.constant 1 : index
    %c1_141 = arith.constant 1 : index
    %289 = memref.load %arg9[%c1_140, %c1_141] : memref<5x2xf32, #tpu.memory_space<smem>>
    %290 = vector.broadcast %289 : f32 to vector<8x128xf32>
    %291 = arith.mulf %290, %272 : vector<8x128xf32>
    %292 = arith.addf %288, %291 : vector<8x128xf32>
    %c2_142 = arith.constant 2 : index
    %293 = memref.load %arg10[%c2_142] : memref<5xf32, #tpu.memory_space<smem>>
    %c2_143 = arith.constant 2 : index
    %c0_144 = arith.constant 0 : index
    %294 = memref.load %arg9[%c2_143, %c0_144] : memref<5x2xf32, #tpu.memory_space<smem>>
    %295 = vector.broadcast %294 : f32 to vector<8x128xf32>
    %296 = arith.mulf %295, %264 : vector<8x128xf32>
    %297 = vector.broadcast %293 : f32 to vector<8x128xf32>
    %298 = arith.addf %297, %296 : vector<8x128xf32>
    %c2_145 = arith.constant 2 : index
    %c1_146 = arith.constant 1 : index
    %299 = memref.load %arg9[%c2_145, %c1_146] : memref<5x2xf32, #tpu.memory_space<smem>>
    %300 = vector.broadcast %299 : f32 to vector<8x128xf32>
    %301 = arith.mulf %300, %272 : vector<8x128xf32>
    %302 = arith.addf %298, %301 : vector<8x128xf32>
    %c3_147 = arith.constant 3 : index
    %303 = memref.load %arg10[%c3_147] : memref<5xf32, #tpu.memory_space<smem>>
    %c3_148 = arith.constant 3 : index
    %c0_149 = arith.constant 0 : index
    %304 = memref.load %arg9[%c3_148, %c0_149] : memref<5x2xf32, #tpu.memory_space<smem>>
    %305 = vector.broadcast %304 : f32 to vector<8x128xf32>
    %306 = arith.mulf %305, %264 : vector<8x128xf32>
    %307 = vector.broadcast %303 : f32 to vector<8x128xf32>
    %308 = arith.addf %307, %306 : vector<8x128xf32>
    %c3_150 = arith.constant 3 : index
    %c1_151 = arith.constant 1 : index
    %309 = memref.load %arg9[%c3_150, %c1_151] : memref<5x2xf32, #tpu.memory_space<smem>>
    %310 = vector.broadcast %309 : f32 to vector<8x128xf32>
    %311 = arith.mulf %310, %272 : vector<8x128xf32>
    %312 = arith.addf %308, %311 : vector<8x128xf32>
    %c4_152 = arith.constant 4 : index
    %313 = memref.load %arg10[%c4_152] : memref<5xf32, #tpu.memory_space<smem>>
    %c4_153 = arith.constant 4 : index
    %c0_154 = arith.constant 0 : index
    %314 = memref.load %arg9[%c4_153, %c0_154] : memref<5x2xf32, #tpu.memory_space<smem>>
    %315 = vector.broadcast %314 : f32 to vector<8x128xf32>
    %316 = arith.mulf %315, %264 : vector<8x128xf32>
    %317 = vector.broadcast %313 : f32 to vector<8x128xf32>
    %318 = arith.addf %317, %316 : vector<8x128xf32>
    %c4_155 = arith.constant 4 : index
    %c1_156 = arith.constant 1 : index
    %319 = memref.load %arg9[%c4_155, %c1_156] : memref<5x2xf32, #tpu.memory_space<smem>>
    %320 = vector.broadcast %319 : f32 to vector<8x128xf32>
    %321 = arith.mulf %320, %272 : vector<8x128xf32>
    %322 = arith.addf %318, %321 : vector<8x128xf32>
    %323 = math.absf %282 : vector<8x128xf32>
    %cst_157 = arith.constant 5.000000e-01 : f32
    %324 = vector.broadcast %cst_157 : f32 to vector<8x128xf32>
    %325 = arith.cmpf ogt, %323, %324 : vector<8x128xf32>
    %cst_158 = arith.constant 0.000000e+00 : f32
    %326 = vector.broadcast %cst_158 : f32 to vector<8x128xf32>
    %327 = arith.select %325, %282, %326 : vector<8x128xi1>, vector<8x128xf32>
    %328 = math.absf %292 : vector<8x128xf32>
    %cst_159 = arith.constant 5.000000e-01 : f32
    %329 = vector.broadcast %cst_159 : f32 to vector<8x128xf32>
    %330 = arith.cmpf ogt, %328, %329 : vector<8x128xf32>
    %cst_160 = arith.constant 0.000000e+00 : f32
    %331 = vector.broadcast %cst_160 : f32 to vector<8x128xf32>
    %332 = arith.select %330, %292, %331 : vector<8x128xi1>, vector<8x128xf32>
    %333 = math.absf %302 : vector<8x128xf32>
    %cst_161 = arith.constant 5.000000e-01 : f32
    %334 = vector.broadcast %cst_161 : f32 to vector<8x128xf32>
    %335 = arith.cmpf ogt, %333, %334 : vector<8x128xf32>
    %cst_162 = arith.constant 0.000000e+00 : f32
    %336 = vector.broadcast %cst_162 : f32 to vector<8x128xf32>
    %337 = arith.select %335, %302, %336 : vector<8x128xi1>, vector<8x128xf32>
    %338 = math.absf %312 : vector<8x128xf32>
    %cst_163 = arith.constant 5.000000e-01 : f32
    %339 = vector.broadcast %cst_163 : f32 to vector<8x128xf32>
    %340 = arith.cmpf ogt, %338, %339 : vector<8x128xf32>
    %cst_164 = arith.constant 0.000000e+00 : f32
    %341 = vector.broadcast %cst_164 : f32 to vector<8x128xf32>
    %342 = arith.select %340, %312, %341 : vector<8x128xi1>, vector<8x128xf32>
    %343 = math.absf %322 : vector<8x128xf32>
    %cst_165 = arith.constant 5.000000e-01 : f32
    %344 = vector.broadcast %cst_165 : f32 to vector<8x128xf32>
    %345 = arith.cmpf ogt, %343, %344 : vector<8x128xf32>
    %cst_166 = arith.constant 0.000000e+00 : f32
    %346 = vector.broadcast %cst_166 : f32 to vector<8x128xf32>
    %347 = arith.select %345, %322, %346 : vector<8x128xi1>, vector<8x128xf32>
    %c0_167 = arith.constant 0 : index
    %348 = memref.load %arg12[%c0_167] : memref<2xf32, #tpu.memory_space<smem>>
    %c0_168 = arith.constant 0 : index
    %c0_169 = arith.constant 0 : index
    %349 = memref.load %arg11[%c0_168, %c0_169] : memref<2x5xf32, #tpu.memory_space<smem>>
    %350 = vector.broadcast %349 : f32 to vector<8x128xf32>
    %351 = arith.mulf %350, %327 : vector<8x128xf32>
    %352 = vector.broadcast %348 : f32 to vector<8x128xf32>
    %353 = arith.addf %352, %351 : vector<8x128xf32>
    %c0_170 = arith.constant 0 : index
    %c1_171 = arith.constant 1 : index
    %354 = memref.load %arg11[%c0_170, %c1_171] : memref<2x5xf32, #tpu.memory_space<smem>>
    %355 = vector.broadcast %354 : f32 to vector<8x128xf32>
    %356 = arith.mulf %355, %332 : vector<8x128xf32>
    %357 = arith.addf %353, %356 : vector<8x128xf32>
    %c0_172 = arith.constant 0 : index
    %c2_173 = arith.constant 2 : index
    %358 = memref.load %arg11[%c0_172, %c2_173] : memref<2x5xf32, #tpu.memory_space<smem>>
    %359 = vector.broadcast %358 : f32 to vector<8x128xf32>
    %360 = arith.mulf %359, %337 : vector<8x128xf32>
    %361 = arith.addf %357, %360 : vector<8x128xf32>
    %c0_174 = arith.constant 0 : index
    %c3_175 = arith.constant 3 : index
    %362 = memref.load %arg11[%c0_174, %c3_175] : memref<2x5xf32, #tpu.memory_space<smem>>
    %363 = vector.broadcast %362 : f32 to vector<8x128xf32>
    %364 = arith.mulf %363, %342 : vector<8x128xf32>
    %365 = arith.addf %361, %364 : vector<8x128xf32>
    %c0_176 = arith.constant 0 : index
    %c4_177 = arith.constant 4 : index
    %366 = memref.load %arg11[%c0_176, %c4_177] : memref<2x5xf32, #tpu.memory_space<smem>>
    %367 = vector.broadcast %366 : f32 to vector<8x128xf32>
    %368 = arith.mulf %367, %347 : vector<8x128xf32>
    %369 = arith.addf %365, %368 : vector<8x128xf32>
    %c1_178 = arith.constant 1 : index
    %370 = memref.load %arg12[%c1_178] : memref<2xf32, #tpu.memory_space<smem>>
    %c1_179 = arith.constant 1 : index
    %c0_180 = arith.constant 0 : index
    %371 = memref.load %arg11[%c1_179, %c0_180] : memref<2x5xf32, #tpu.memory_space<smem>>
    %372 = vector.broadcast %371 : f32 to vector<8x128xf32>
    %373 = arith.mulf %372, %327 : vector<8x128xf32>
    %374 = vector.broadcast %370 : f32 to vector<8x128xf32>
    %375 = arith.addf %374, %373 : vector<8x128xf32>
    %c1_181 = arith.constant 1 : index
    %c1_182 = arith.constant 1 : index
    %376 = memref.load %arg11[%c1_181, %c1_182] : memref<2x5xf32, #tpu.memory_space<smem>>
    %377 = vector.broadcast %376 : f32 to vector<8x128xf32>
    %378 = arith.mulf %377, %332 : vector<8x128xf32>
    %379 = arith.addf %375, %378 : vector<8x128xf32>
    %c1_183 = arith.constant 1 : index
    %c2_184 = arith.constant 2 : index
    %380 = memref.load %arg11[%c1_183, %c2_184] : memref<2x5xf32, #tpu.memory_space<smem>>
    %381 = vector.broadcast %380 : f32 to vector<8x128xf32>
    %382 = arith.mulf %381, %337 : vector<8x128xf32>
    %383 = arith.addf %379, %382 : vector<8x128xf32>
    %c1_185 = arith.constant 1 : index
    %c3_186 = arith.constant 3 : index
    %384 = memref.load %arg11[%c1_185, %c3_186] : memref<2x5xf32, #tpu.memory_space<smem>>
    %385 = vector.broadcast %384 : f32 to vector<8x128xf32>
    %386 = arith.mulf %385, %342 : vector<8x128xf32>
    %387 = arith.addf %383, %386 : vector<8x128xf32>
    %c1_187 = arith.constant 1 : index
    %c4_188 = arith.constant 4 : index
    %388 = memref.load %arg11[%c1_187, %c4_188] : memref<2x5xf32, #tpu.memory_space<smem>>
    %389 = vector.broadcast %388 : f32 to vector<8x128xf32>
    %390 = arith.mulf %389, %347 : vector<8x128xf32>
    %391 = arith.addf %387, %390 : vector<8x128xf32>
    %392 = math.tanh %369 : vector<8x128xf32>
    %393 = math.tanh %391 : vector<8x128xf32>
    %c0_189 = arith.constant 0 : index
    %394 = memref.load %arg14[%c0_189] : memref<2xf32, #tpu.memory_space<smem>>
    %c0_190 = arith.constant 0 : index
    %c0_191 = arith.constant 0 : index
    %395 = memref.load %arg13[%c0_190, %c0_191] : memref<2x2xf32, #tpu.memory_space<smem>>
    %396 = vector.broadcast %395 : f32 to vector<8x128xf32>
    %397 = arith.mulf %396, %392 : vector<8x128xf32>
    %398 = vector.broadcast %394 : f32 to vector<8x128xf32>
    %399 = arith.addf %398, %397 : vector<8x128xf32>
    %c0_192 = arith.constant 0 : index
    %c1_193 = arith.constant 1 : index
    %400 = memref.load %arg13[%c0_192, %c1_193] : memref<2x2xf32, #tpu.memory_space<smem>>
    %401 = vector.broadcast %400 : f32 to vector<8x128xf32>
    %402 = arith.mulf %401, %393 : vector<8x128xf32>
    %403 = arith.addf %399, %402 : vector<8x128xf32>
    %c1_194 = arith.constant 1 : index
    %404 = memref.load %arg14[%c1_194] : memref<2xf32, #tpu.memory_space<smem>>
    %c1_195 = arith.constant 1 : index
    %c0_196 = arith.constant 0 : index
    %405 = memref.load %arg13[%c1_195, %c0_196] : memref<2x2xf32, #tpu.memory_space<smem>>
    %406 = vector.broadcast %405 : f32 to vector<8x128xf32>
    %407 = arith.mulf %406, %392 : vector<8x128xf32>
    %408 = vector.broadcast %404 : f32 to vector<8x128xf32>
    %409 = arith.addf %408, %407 : vector<8x128xf32>
    %c1_197 = arith.constant 1 : index
    %c1_198 = arith.constant 1 : index
    %410 = memref.load %arg13[%c1_197, %c1_198] : memref<2x2xf32, #tpu.memory_space<smem>>
    %411 = vector.broadcast %410 : f32 to vector<8x128xf32>
    %412 = arith.mulf %411, %393 : vector<8x128xf32>
    %413 = arith.addf %409, %412 : vector<8x128xf32>
    %c0_199 = arith.constant 0 : index
    %c0_200 = arith.constant 0 : index
    %c0_201 = arith.constant 0 : index
    %414 = vector.load %arg15[%c0_199, %c0_200, %c0_201] : memref<2x8x128xf32, #tpu.memory_space<vmem>>, vector<1x8x128xf32>
    %415 = vector.shape_cast %414 : vector<1x8x128xf32> to vector<8x128xf32>
    %416 = vector.shape_cast %403 : vector<8x128xf32> to vector<1x8x128xf32>
    tpu.vector_store %arg15[%c0_199, %c0_200, %c0_201], %416 {strides = array<i32>} : memref<2x8x128xf32, #tpu.memory_space<vmem>>, vector<1x8x128xf32>,
    %c1_202 = arith.constant 1 : index
    %c0_203 = arith.constant 0 : index
    %c0_204 = arith.constant 0 : index
    %417 = vector.load %arg15[%c1_202, %c0_203, %c0_204] : memref<2x8x128xf32, #tpu.memory_space<vmem>>, vector<1x8x128xf32>
    %418 = vector.shape_cast %417 : vector<1x8x128xf32> to vector<8x128xf32>
    %419 = vector.shape_cast %413 : vector<8x128xf32> to vector<1x8x128xf32>
    tpu.vector_store %arg15[%c1_202, %c0_203, %c0_204], %419 {strides = array<i32>} : memref<2x8x128xf32, #tpu.memory_space<vmem>>, vector<1x8x128xf32>,
    return
  }
  func.func @transform_0(%arg0: i32) -> (i32, i32, i32) {
    %c0_i32 = arith.constant 0 : i32
    %c0_i32_0 = arith.constant 0 : i32
    %c0_i32_1 = arith.constant 0 : i32
    return %c0_i32, %arg0, %c0_i32_0 : i32, i32, i32
  }
  func.func @transform_1(%arg0: i32) -> (i32, i32) {
    %c0_i32 = arith.constant 0 : i32
    %c0_i32_0 = arith.constant 0 : i32
    %c0_i32_1 = arith.constant 0 : i32
    return %c0_i32, %c0_i32_0 : i32, i32
  }
  func.func @transform_2(%arg0: i32) -> i32 {
    %c0_i32 = arith.constant 0 : i32
    %c0_i32_0 = arith.constant 0 : i32
    return %c0_i32 : i32
  }
  func.func @transform_3(%arg0: i32) -> i32 {
    %c0_i32 = arith.constant 0 : i32
    %c0_i32_0 = arith.constant 0 : i32
    return %c0_i32 : i32
  }
  func.func @transform_4(%arg0: i32) -> (i32, i32) {
    %c0_i32 = arith.constant 0 : i32
    %c0_i32_0 = arith.constant 0 : i32
    %c0_i32_1 = arith.constant 0 : i32
    return %c0_i32, %c0_i32_0 : i32, i32
  }
  func.func @transform_5(%arg0: i32) -> i32 {
    %c0_i32 = arith.constant 0 : i32
    %c0_i32_0 = arith.constant 0 : i32
    return %c0_i32 : i32
  }
  func.func @transform_6(%arg0: i32) -> (i32, i32) {
    %c0_i32 = arith.constant 0 : i32
    %c0_i32_0 = arith.constant 0 : i32
    %c0_i32_1 = arith.constant 0 : i32
    return %c0_i32, %c0_i32_0 : i32, i32
  }
  func.func @transform_7(%arg0: i32) -> i32 {
    %c0_i32 = arith.constant 0 : i32
    %c0_i32_0 = arith.constant 0 : i32
    return %c0_i32 : i32
  }
  func.func @transform_8(%arg0: i32) -> (i32, i32) {
    %c0_i32 = arith.constant 0 : i32
    %c0_i32_0 = arith.constant 0 : i32
    %c0_i32_1 = arith.constant 0 : i32
    return %c0_i32, %c0_i32_0 : i32, i32
  }
  func.func @transform_9(%arg0: i32) -> i32 {
    %c0_i32 = arith.constant 0 : i32
    %c0_i32_0 = arith.constant 0 : i32
    return %c0_i32 : i32
  }
  func.func @transform_10(%arg0: i32) -> (i32, i32) {
    %c0_i32 = arith.constant 0 : i32
    %c0_i32_0 = arith.constant 0 : i32
    %c0_i32_1 = arith.constant 0 : i32
    return %c0_i32, %c0_i32_0 : i32, i32
  }
  func.func @transform_11(%arg0: i32) -> i32 {
    %c0_i32 = arith.constant 0 : i32
    %c0_i32_0 = arith.constant 0 : i32
    return %c0_i32 : i32
  }
  func.func @transform_12(%arg0: i32) -> (i32, i32) {
    %c0_i32 = arith.constant 0 : i32
    %c0_i32_0 = arith.constant 0 : i32
    %c0_i32_1 = arith.constant 0 : i32
    return %c0_i32, %c0_i32_0 : i32, i32
  }
  func.func @transform_13(%arg0: i32) -> i32 {
    %c0_i32 = arith.constant 0 : i32
    %c0_i32_0 = arith.constant 0 : i32
    return %c0_i32 : i32
  }
  func.func @transform_14(%arg0: i32) -> (i32, i32, i32) {
    %c0_i32 = arith.constant 0 : i32
    %c0_i32_0 = arith.constant 0 : i32
    %c0_i32_1 = arith.constant 0 : i32
    return %c0_i32, %arg0, %c0_i32_0 : i32, i32, i32
  }
}

</mosaic_0001>

<bundles_post_ra>
// kernel: tpu_custom_call.1
= control target key start
LH: loop header
LB: loop body
LE: loop exit
PB: predicated region body
PF: predicated region fallthrough
CT: control target
= control target key end

     0   :  { %20 = vsyncpa [#allocation4], 0  ;;  %s1341_s0 = inlined_call_operand.hbm [shape: f32[7,8,128], index: 0, kind: input, shape index: {}]   ;;  %s1342_s1 = inlined_call_operand.vmem [shape: f32[2,7], index: 1, kind: input, shape index: {}]   ;;  %s1343_s2 = inlined_call_operand.vmem [shape: f32[2], index: 2, kind: input, shape index: {}]   ;;  %s1344_s3 = inlined_call_operand.<no memory space> [shape: f32[1], index: 3, kind: input, shape index: {}]   ;;  %s1345_s4 = inlined_call_operand.vmem [shape: f32[6,2], index: 4, kind: input, shape index: {}]   ;;  %s1346_s5 = inlined_call_operand.vmem [shape: f32[6], index: 5, kind: input, shape index: {}]   ;;  %s1347_s6 = inlined_call_operand.vmem [shape: f32[2,6], index: 6, kind: input, shape index: {}]   ;;  %s1348_s7 = inlined_call_operand.vmem [shape: f32[2], index: 7, kind: input, shape index: {}]   ;;  %s1349_s8 = inlined_call_operand.vmem [shape: f32[5,2], index: 8, kind: input, shape index: {}]   ;;  %s1350_s9 = inlined_call_operand.vmem [shape: f32[5], index: 9, kind: input, shape index: {}]   ;;  %s1351_s10 = inlined_call_operand.vmem [shape: f32[2,5], index: 10, kind: input, shape index: {}]   ;;  %s1352_s11 = inlined_call_operand.vmem [shape: f32[2], index: 11, kind: input, shape index: {}]   ;;  %s1353_s12 = inlined_call_operand.vmem [shape: f32[2,2], index: 12, kind: input, shape index: {}]   ;;  %s1354_s13 = inlined_call_operand.vmem [shape: f32[2], index: 13, kind: input, shape index: {}]   ;;  %s1355_s14 = inlined_call_operand.hbm [shape: f32[2,8,128], index: 14, kind: output, shape index: {}]  }
   0x1   :  { %21 = vsyncpa [#allocation6], 0 }
   0x2   :  { %22 = vsyncpa [#allocation9], 0 }
   0x3   :  { %23 = vsyncpa [#allocation12], 0 }
   0x4   :  { %24 = vsyncpa [#allocation15], 0 }
   0x5   :  { %25 = vsyncpa [#allocation18], 0 }
   0x6   :  { %26 = vsyncpa [#allocation21], 0 }
   0x7   :  { %27 = vsyncpa [#allocation24], 0  ;;  %s57_s15 = sshll.u32 %s1343_s2, 4  ;;  %s58_s15 = int_to_ptr.vmem [resolvable:$true] %s57_s15 }
   0x8   :  { %28 = vsyncpa [#allocation5], 0  ;;  %s79_s18 = sshll.u32 %s1346_s5, 4  ;;  %s721_s19 = scalar_lea.vmem %s58_s15, 16  ;;  %s80_s18 = int_to_ptr.vmem [resolvable:$true] %s79_s18 }
   0x9   :  { %p722_p0 = scmp.ne.s32.totalorder %s58_s15, %s721_s19  ;;  %p726_p1 = scmp.lt.s32.totalorder %s58_s15, %s58_s15 }
   0xa   :  { %p727_p2 = scmp.lt.s32.totalorder %s721_s19, %s721_s19 }
   0xc   :  { %p728_p3 = por %p727_p2, %p726_p1 }
   0xe   :  { %p729_p4 = pnand %p728_p3, %p722_p0 }
  0x10   :  { %732 = shalt.err (!%p729_p4)
}
  0x11   :  { %s927_s20 = smov [#allocation8]   ;;  %s733_s21 = scalar_lea.vmem %s80_s18, 16 }
  0x12   :  { %60 = dma.vmem_to_smem %s58_s15, 16, %s927_s20, [#allocation9]  }
  0x13   :  { %p734_p5 = scmp.ne.s32.totalorder %s80_s18, %s733_s21  ;;  %p738_p6 = scmp.lt.s32.totalorder %s80_s18, %s80_s18 }
  0x14   :  { %p739_p7 = scmp.lt.s32.totalorder %s733_s21, %s733_s21 }
  0x16   :  { %p740_p8 = por %p739_p7, %p738_p6 }
  0x18   :  { %p741_p9 = pnand %p740_p8, %p734_p5 }
  0x1a   :  { %744 = shalt.err (!%p741_p9)
}
  0x1b   :  { %s928_s2 = smov [#allocation11]   ;;  %s99_s23 = sshll.u32 %s1348_s7, 4  ;;  %s100_s23 = int_to_ptr.vmem [resolvable:$true] %s99_s23 }
  0x1c   :  { %82 = dma.vmem_to_smem %s80_s18, 16, %s928_s2, [#allocation12]  }
  0x1d   :  { %s119_s26 = sshll.u32 %s1350_s9, 4  ;;  %s745_s27 = scalar_lea.vmem %s100_s23, 16  ;;  %s120_s26 = int_to_ptr.vmem [resolvable:$true] %s119_s26 }
  0x1e   :  { %p746_p10 = scmp.ne.s32.totalorder %s100_s23, %s745_s27  ;;  %p750_p11 = scmp.lt.s32.totalorder %s100_s23, %s100_s23 }
  0x1f   :  { %p751_p12 = scmp.lt.s32.totalorder %s745_s27, %s745_s27 }
  0x21   :  { %p752_p13 = por %p751_p12, %p750_p11 }
  0x23   :  { %p753_p0 = pnand %p752_p13, %p746_p10 }
  0x25   :  { %756 = shalt.err (!%p753_p0)
}
  0x26   :  { %s929_s28 = smov [#allocation14]   ;;  %s757_s29 = scalar_lea.vmem %s120_s26, 16 }
  0x27   :  { %102 = dma.vmem_to_smem %s100_s23, 16, %s929_s28, [#allocation15]  }
  0x28   :  { %p758_p1 = scmp.ne.s32.totalorder %s120_s26, %s757_s29  ;;  %p762_p2 = scmp.lt.s32.totalorder %s120_s26, %s120_s26 }
  0x29   :  { %p763_p3 = scmp.lt.s32.totalorder %s757_s29, %s757_s29 }
  0x2b   :  { %p764_p4 = por %p763_p3, %p762_p2 }
  0x2d   :  { %p765_p5 = pnand %p764_p4, %p758_p1 }
  0x2f   :  { %768 = shalt.err (!%p765_p5)
}
  0x30   :  { %s930_s7 = smov [#allocation17]   ;;  %s139_s15 = sshll.u32 %s1352_s11, 4  ;;  %s140_s15 = int_to_ptr.vmem [resolvable:$true] %s139_s15 }
  0x31   :  { %122 = dma.vmem_to_smem %s120_s26, 16, %s930_s7, [#allocation18]  }
  0x32   :  { %s769_s16 = scalar_lea.vmem %s140_s15, 16  ;;  %p774_p7 = scmp.lt.s32.totalorder %s140_s15, %s140_s15 }
  0x33   :  { %p770_p6 = scmp.ne.s32.totalorder %s140_s15, %s769_s16  ;;  %p775_p8 = scmp.lt.s32.totalorder %s769_s16, %s769_s16 }
  0x35   :  { %p776_p9 = por %p775_p8, %p774_p7 }
  0x37   :  { %p777_p10 = pnand %p776_p9, %p770_p6 }
  0x39   :  { %780 = shalt.err (!%p777_p10)
}
  0x3a   :  { %s931_s17 = smov [#allocation20]   ;;  %s932_s18 = smov [#allocation3]  }
  0x3b   :  { %142 = dma.vmem_to_smem %s140_s15, 16, %s931_s17, [#allocation21]  }
  0x3c   :  { %s34_s19 = sshll.u32 %s932_s18, 4  ;;  %s781_s2 = scalar_lea.hbm %s1341_s0, 896  ;;  %s35_s19 = int_to_ptr.vmem [resolvable:$true] %s34_s19 }
  0x3d   :  { %p782_p11 = scmp.ne.s32.totalorder %s1341_s0, %s781_s2  ;;  %p785_p12 = scmp.lt.u32.totalorder %s781_s2, %s1341_s0 }
  0x3f   :  { %p787_p13 = pnand %p785_p12, %p782_p11 }
  0x41   :  { %790 = shalt.err (!%p787_p13)
}
  0x42   :  { %s791_s24 = scalar_lea.vmem %s35_s19, 896  ;;  %p796_p1 = scmp.lt.s32.totalorder %s35_s19, %s35_s19 }
  0x43   :  { %p792_p0 = scmp.ne.s32.totalorder %s35_s19, %s791_s24  ;;  %p797_p2 = scmp.lt.s32.totalorder %s791_s24, %s791_s24 }
  0x45   :  { %p798_p3 = por %p797_p2, %p796_p1 }
  0x47   :  { %p799_p4 = pnand %p798_p3, %p792_p0 }
  0x49   :  { %802 = shalt.err (!%p799_p4)
}
  0x4a   :  { %s933_s25 = smov 128   ;;  %s934_s26 = smov 8  }
  0x4b   :  { %40 = dma.hbm_to_vmem [thread:$0]  %s1341_s0, 896, %s35_s19, [#allocation4], %s933_s25, %s933_s25, %s934_s26  }
  0x4c   :  { %s47_s9 = sshll.u32 %s1342_s1, 4  ;;  %s69_s16 = sshll.u32 %s1345_s4, 4  ;;  %s48_s9 = int_to_ptr.vmem [resolvable:$true] %s47_s9  ;;  %s70_s16 = int_to_ptr.vmem [resolvable:$true] %s69_s16 }
  0x4d   :  { %s803_s17 = scalar_lea.vmem %s48_s9, 32  ;;  %p808_p6 = scmp.lt.s32.totalorder %s48_s9, %s48_s9 }
  0x4e   :  { %p804_p5 = scmp.ne.s32.totalorder %s48_s9, %s803_s17  ;;  %p809_p7 = scmp.lt.s32.totalorder %s803_s17, %s803_s17 }
  0x50   :  { %p810_p8 = por %p809_p7, %p808_p6 }
  0x52   :  { %p811_p9 = pnand %p810_p8, %p804_p5 }
  0x54   :  { %814 = shalt.err (!%p811_p9)
}
  0x55   :  { %s935_s18 = smov [#allocation7]   ;;  %s815_s0 = scalar_lea.vmem %s70_s16, 128 }
  0x56   :  { %50 = dma.vmem_to_smem %s48_s9, 32, %s935_s18, [#allocation6]  }
  0x57   :  { %p816_p10 = scmp.ne.s32.totalorder %s70_s16, %s815_s0  ;;  %p820_p11 = scmp.lt.s32.totalorder %s70_s16, %s70_s16 }
  0x58   :  { %p821_p12 = scmp.lt.s32.totalorder %s815_s0, %s815_s0 }
  0x5a   :  { %p822_p13 = por %p821_p12, %p820_p11 }
  0x5c   :  { %p823_p0 = pnand %p822_p13, %p816_p10 }
  0x5e   :  { %826 = shalt.err (!%p823_p0)
}
  0x5f   :  { %s936_s1 = smov [#allocation10]   ;;  %s89_s20 = sshll.u32 %s1347_s6, 4  ;;  %s90_s20 = int_to_ptr.vmem [resolvable:$true] %s89_s20 }
  0x60   :  { %72 = dma.vmem_to_smem %s70_s16, 128, %s936_s1, [#allocation9]  }
  0x61   :  { %s109_s5 = sshll.u32 %s1349_s8, 4  ;;  %s827_s22 = scalar_lea.vmem %s90_s20, 32  ;;  %s110_s5 = int_to_ptr.vmem [resolvable:$true] %s109_s5 }
  0x62   :  { %p828_p1 = scmp.ne.s32.totalorder %s90_s20, %s827_s22  ;;  %p832_p2 = scmp.lt.s32.totalorder %s90_s20, %s90_s20 }
  0x63   :  { %p833_p3 = scmp.lt.s32.totalorder %s827_s22, %s827_s22 }
  0x65   :  { %p834_p4 = por %p833_p3, %p832_p2 }
  0x67   :  { %p835_p5 = pnand %p834_p4, %p828_p1 }
  0x69   :  { %838 = shalt.err (!%p835_p5)
}
  0x6a   :  { %s937_s11 = smov [#allocation13]   ;;  %s839_s23 = scalar_lea.vmem %s110_s5, 128 }
  0x6b   :  { %92 = dma.vmem_to_smem %s90_s20, 32, %s937_s11, [#allocation12]  }
  0x6c   :  { %p840_p6 = scmp.ne.s32.totalorder %s110_s5, %s839_s23  ;;  %p844_p7 = scmp.lt.s32.totalorder %s110_s5, %s110_s5 }
  0x6d   :  { %p845_p8 = scmp.lt.s32.totalorder %s839_s23, %s839_s23 }
  0x6f   :  { %p846_p9 = por %p845_p8, %p844_p7 }
  0x71   :  { %p847_p10 = pnand %p846_p9, %p840_p6 }
  0x73   :  { %850 = shalt.err (!%p847_p10)
}
  0x74   :  { %s938_s6 = smov [#allocation16]   ;;  %s129_s27 = sshll.u32 %s1351_s10, 4  ;;  %s130_s27 = int_to_ptr.vmem [resolvable:$true] %s129_s27 }
  0x75   :  { %112 = dma.vmem_to_smem %s110_s5, 128, %s938_s6, [#allocation15]  }
  0x76   :  { %s149_s7 = sshll.u32 %s1353_s12, 4  ;;  %s851_s9 = scalar_lea.vmem %s130_s27, 32  ;;  %s150_s7 = int_to_ptr.vmem [resolvable:$true] %s149_s7 }
  0x77   :  { %p852_p11 = scmp.ne.s32.totalorder %s130_s27, %s851_s9  ;;  %p856_p12 = scmp.lt.s32.totalorder %s130_s27, %s130_s27 }
  0x78   :  { %p857_p13 = scmp.lt.s32.totalorder %s851_s9, %s851_s9 }
  0x7a   :  { %p858_p0 = por %p857_p13, %p856_p12 }
  0x7c   :  { %p859_p1 = pnand %p858_p0, %p852_p11 }
  0x7e   :  { %862 = shalt.err (!%p859_p1)
}
  0x7f   :  { %s939_s30 = smov [#allocation19]   ;;  %s863_s15 = scalar_lea.vmem %s150_s7, 32 }
  0x80   :  { %132 = dma.vmem_to_smem %s130_s27, 32, %s939_s30, [#allocation18]  }
  0x81   :  { %p864_p2 = scmp.ne.s32.totalorder %s150_s7, %s863_s15  ;;  %p868_p3 = scmp.lt.s32.totalorder %s150_s7, %s150_s7 }
  0x82   :  { %p869_p4 = scmp.lt.s32.totalorder %s863_s15, %s863_s15 }
  0x84   :  { %p870_p5 = por %p869_p4, %p868_p3 }
  0x86   :  { %p871_p6 = pnand %p870_p5, %p864_p2 }
  0x88   :  { %874 = shalt.err (!%p871_p6)
}
  0x89   :  { %s940_s10 = smov [#allocation22]   ;;  %s159_s17 = sshll.u32 %s1354_s13, 4  ;;  %s160_s17 = int_to_ptr.vmem [resolvable:$true] %s159_s17 }
  0x8a   :  { %152 = dma.vmem_to_smem %s150_s7, 32, %s940_s10, [#allocation21]  }
  0x8b   :  { %s875_s18 = scalar_lea.vmem %s160_s17, 16  ;;  %p880_p8 = scmp.lt.s32.totalorder %s160_s17, %s160_s17 }
  0x8c   :  { %p876_p7 = scmp.ne.s32.totalorder %s160_s17, %s875_s18  ;;  %p881_p9 = scmp.lt.s32.totalorder %s875_s18, %s875_s18 }
  0x8e   :  { %p882_p10 = por %p881_p9, %p880_p8 }
  0x90   :  { %p883_p11 = pnand %p882_p10, %p876_p7 }
  0x92   :  { %886 = shalt.err (!%p883_p11)
}
  0x93   :  { %s941_s0 = smov [#allocation23]  }
  0x94   :  { %162 = dma.vmem_to_smem %s160_s17, 16, %s941_s0, [#allocation24]  }
  0x95   :  { %909 = dma.done.wait [#allocation4], 896  }
  0x96   :  { %910 = vsyncadd [#allocation4], 4294966400 }
  0x97   :  { %911 = dma.done.wait [#allocation6], 32  }
  0x98   :  { %912 = vsyncadd [#allocation6], 4294967264 }
  0x99   :  { %913 = dma.done.wait [#allocation9], 144  }
  0x9a   :  { %914 = vsyncadd [#allocation9], 4294967152 }
  0x9b   :  { %915 = dma.done.wait [#allocation12], 48  }
  0x9c   :  { %916 = vsyncadd [#allocation12], 4294967248 }
  0x9d   :  { %917 = dma.done.wait [#allocation15], 144  }
  0x9e   :  { %918 = vsyncadd [#allocation15], 4294967152 }
  0x9f   :  { %919 = dma.done.wait [#allocation18], 48  }
  0xa0   :  { %920 = vsyncadd [#allocation18], 4294967248 }
  0xa1   :  { %921 = dma.done.wait [#allocation21], 48  }
  0xa2   :  { %922 = vsyncadd [#allocation21], 4294967248 }
  0xa3   :  { %923 = dma.done.wait [#allocation24], 16  }
  0xa4   :  { %924 = vsyncadd [#allocation24], 4294967280 }
  0xa5   :  { %202 = sfence }
  0xa6   :  { %s216_s13 = sld [smem:[#allocation8]]  ;;  %s608_s4 = sld [smem:[#allocation7 + $0x1]]  ;;  %v203_v0 = vld [vmem:[#allocation3] sm:$0xff]  ;;  %v205_v1 = vld [vmem:[#allocation3 + $0x8] sm:$0xff]  ;;  %v207_v2 = vld [vmem:[#allocation3 + $0x10] sm:$0xff]  ;;  %v278_v43 = vstv %s1344_s3 }
  0xa7   :  { %s217_s1 = sld [smem:[#allocation7]]  ;;  %s609_s19 = sld [smem:[#allocation7 + $0x2]]  ;;  %v209_v8 = vld [vmem:[#allocation3 + $0x18] sm:$0xff]  ;;  %v211_v13 = vld [vmem:[#allocation3 + $0x20] sm:$0xff]  ;;  %v213_v21 = vld [vmem:[#allocation3 + $0x28] sm:$0xff] }
  0xa8   :  { %s1069_s20 = sld [smem:[#allocation7 + $0x3]]  ;;  %s1071_s21 = sld [smem:[#allocation7 + $0x4]]  ;;  %v215_v30 = vld [vmem:[#allocation3 + $0x30] sm:$0xff] }
  0xa9   :  { %s1073_s2 = sld [smem:[#allocation7 + $0x5]]  ;;  %s1075_s5 = sld [smem:[#allocation7 + $0x6]] }
  0xaa   :  { %s1077_s22 = sld [smem:[#allocation8 + $0x1]]  ;;  %s615_s11 = sld [smem:[#allocation7 + $0x80]] }
  0xab   :  { %s1079_s23 = sld [smem:[#allocation7 + $0x81]]  ;;  %s1081_s6 = sld [smem:[#allocation7 + $0x82]] }
  0xac   :  { %v220_v4 = vstv %s216_s13  ;;  %s1083_s8 = sld [smem:[#allocation7 + $0x83]]  ;;  %s1085_s24 = sld [smem:[#allocation7 + $0x84]]  ;;  %v223_v6 = vstv %s608_s4 }
  0xad   :  { %v218_v3 = vstv %s217_s1  ;;  %v227_v7 = vstv %s609_s19  ;;  %v224_v9 = vmul.f32 %v223_v6, %v205_v1  ;;  %s1088_s27 = sld [smem:[#allocation7 + $0x85]]  ;;  %s1090_s28 = sld [smem:[#allocation7 + $0x86]] }
  0xae   :  { %v219_v5 = vmul.f32 %v218_v3, %v203_v0  ;;  %v231_v10 = vstv %s1069_s20  ;;  %v228_v12 = vmul.f32 %v227_v7, %v207_v2  ;;  %s1092_s29 = sld [smem:[#allocation11]]  ;;  %v235_v14 = vstv %s1071_s21  ;;  %s1098_s9 = sld [smem:[#allocation10 + $0x1]] }
  0xaf   :  { %s1094_s7 = sld [smem:[#allocation10]]  ;;  %s1100_s30 = sld [smem:[#allocation11 + $0x1]]  ;;  %v232_v18 = vmul.f32 %v231_v10, %v209_v8  ;;  %v239_v22 = vstv %s1073_s2  ;;  %v236_v27 = vmul.f32 %v235_v14, %v211_v13  ;;  %v243_v31 = vstv %s1075_s5 }
  0xb0   :  { %v221_v11 = vadd.f32 %v220_v4, %v219_v5  ;;  %v248_v15 = vstv %s615_s11  ;;  %v250_v16 = vstv %s1077_s22  ;;  %s1103_s15 = sld [smem:[#allocation10 + $0x80]]  ;;  %s1105_s10 = sld [smem:[#allocation10 + $0x81]]  ;;  %v240_v34 = vmul.f32 %v239_v22, %v213_v21 }
  0xb1   :  { %v249_v19 = vmul.f32 %v248_v15, %v203_v0  ;;  %v253_v20 = vstv %s1079_s23  ;;  %v257_v24 = vstv %s1081_s6  ;;  %s1110_s12 = sld [smem:[#allocation11 + $0x2]]  ;;  %s1112_s16 = sld [smem:[#allocation10 + $0x100]]  ;;  %v244_v40 = vmul.f32 %v243_v31, %v215_v30 }
  0xb2   :  { %v225_v17 = vadd.f32 %v224_v9, %v221_v11  ;;  %v254_v23 = vmul.f32 %v253_v20, %v205_v1  ;;  %v261_v25 = vstv %s1083_s8  ;;  %v258_v29 = vmul.f32 %v257_v24, %v207_v2  ;;  %s1114_s17 = sld [smem:[#allocation10 + $0x101]]  ;;  %s1116_s18 = sld [smem:[#allocation11 + $0x3]] }
  0xb3   :  { %v251_v28 = vadd.f32 %v250_v16, %v249_v19  ;;  %v265_v32 = vstv %s1085_s24  ;;  %s1120_s0 = sld [smem:[#allocation10 + $0x180]]  ;;  %s1122_s13 = sld [smem:[#allocation10 + $0x181]]  ;;  %v262_v36 = vmul.f32 %v261_v25, %v209_v8  ;;  %v269_v37 = vstv %s1088_s27 }
  0xb4   :  { %v229_v26 = vadd.f32 %v228_v12, %v225_v17  ;;  %s1124_s1 = sld [smem:[#allocation11 + $0x4]]  ;;  %s1126_s4 = sld [smem:[#allocation10 + $0x200]]  ;;  %v273_v38 = vstv %s1090_s28  ;;  %v266_v42 = vmul.f32 %v265_v32, %v211_v13  ;;  %v270_v47 = vmul.f32 %v269_v37, %v213_v21 }
  0xb5   :  { %v255_v35 = vadd.f32 %v254_v23, %v251_v28  ;;  %s1130_s19 = sld [smem:[#allocation10 + $0x201]]  ;;  %s1132_s20 = sld [smem:[#allocation10 + $0x280]]  ;;  %v286_v44 = vstv %s1094_s7  ;;  %v274_v48 = vmul.f32 %v273_v38, %v215_v30  ;;  %v288_v49 = vstv %s1092_s29 }
  0xb6   :  { %v233_v33 = vadd.f32 %v232_v18, %v229_v26  ;;  %s1134_s21 = sld [smem:[#allocation11 + $0x5]]  ;;  %s1136_s2 = sld [smem:[#allocation10 + $0x281]]  ;;  %v291_v50 = vstv %s1098_s9  ;;  %v296_v51 = vstv %s1103_s15  ;;  %v298_v52 = vstv %s1100_s30 }
  0xb7   :  { %v259_v41 = vadd.f32 %v258_v29, %v255_v35  ;;  %v301_v55 = vstv %s1105_s10  ;;  %v306_v56 = vstv %s1112_s16  ;;  %v308_v57 = vstv %s1110_s12  ;;  %s1177_s3 = sld [smem:[#allocation14]]  ;;  %s1181_s23 = sld [smem:[#allocation13 + $0x1]] }
  0xb8   :  { %v237_v39 = vadd.f32 %v236_v27, %v233_v33  ;;  %v311_v58 = vstv %s1114_s17  ;;  %v318_v60 = vstv %s1116_s18  ;;  %s1179_s11 = sld [smem:[#allocation13]]  ;;  %s1183_s6 = sld [smem:[#allocation13 + $0x2]] }
  0xb9   :  { %v263_v46 = vadd.f32 %v262_v36, %v259_v41  ;;  %v316_v59 = vstv %s1120_s0  ;;  %v321_v63 = vstv %s1122_s13  ;;  %s1185_s8 = sld [smem:[#allocation13 + $0x3]]  ;;  %s1187_s24 = sld [smem:[#allocation14 + $0x1]] }
  0xba   :  { %v241_v45 = vadd.f32 %v240_v34, %v237_v39  ;;  %v326_v0 = vstv %s1126_s4  ;;  %v328_v1 = vstv %s1124_s1  ;;  %s1189_s27 = sld [smem:[#allocation13 + $0x80]]  ;;  %s1191_s28 = sld [smem:[#allocation13 + $0x81]] }
  0xbb   :  { %v267_v54 = vadd.f32 %v266_v42, %v263_v46  ;;  %v331_v2 = vstv %s1130_s19  ;;  %v336_v3 = vstv %s1132_s20  ;;  %s1193_s29 = sld [smem:[#allocation13 + $0x82]]  ;;  %s1195_s7 = sld [smem:[#allocation13 + $0x83]] }
  0xbc   :  { %v245_v53 = vadd.f32 %v244_v40, %v241_v45  ;;  %v338_v6 = vstv %s1134_s21  ;;  %v341_v7 = vstv %s1136_s2  ;;  %s1202_s9 = sld [smem:[#allocation13 + $0x4]]  ;;  %s1204_s30 = sld [smem:[#allocation13 + $0x5]] }
  0xbd   :  { %v271_v61 = vadd.f32 %v270_v47, %v267_v54  ;;  %s1209_s15 = sld [smem:[#allocation13 + $0x84]]  ;;  %s1214_s10 = sld [smem:[#allocation13 + $0x85]] }
  0xbe   :  { %vm277_vm0 = vcmp.gt.f32.partialorder %v245_v53, 0.0  ;;  %v279_v62 = vmul.f32 %v278_v43, %v245_v53  ;;  %v388_v46 = vstv %s1179_s11  ;;  %s1243_s12 = sld [smem:[#allocation17]]  ;;  %s1247_s17 = sld [smem:[#allocation16 + $0x1]] }
  0xbf   :  { %v275_v4 = vadd.f32 %v274_v48, %v271_v61  ;;  %v390_v48 = vstv %s1177_s3  ;;  %s1245_s16 = sld [smem:[#allocation16]]  ;;  %s1249_s18 = sld [smem:[#allocation17 + $0x1]] }
  0xc0   :  { %v280_v5 = vsel %vm277_vm0, %v245_v53, %v279_v62  ;;  %v414_v54 = vstv %s1189_s27  ;;  %s1251_s0 = sld [smem:[#allocation16 + $0x80]]  ;;  %s1253_s13 = sld [smem:[#allocation16 + $0x81]] }
  0xc1   :  { %v287_v8 = vmul.f32 %v286_v44, %v280_v5  ;;  %v297_v9 = vmul.f32 %v296_v51, %v280_v5  ;;  %v307_v10 = vmul.f32 %v306_v56, %v280_v5  ;;  %v317_v11 = vmul.f32 %v316_v59, %v280_v5  ;;  %s1255_s1 = sld [smem:[#allocation17 + $0x2]]  ;;  %s1257_s4 = sld [smem:[#allocation16 + $0x100]] }
  0xc2   :  { %vm281_vm1 = vcmp.gt.f32.partialorder %v275_v4, 0.0  ;;  %v282_v12 = vmul.f32 %v278_v43, %v275_v4  ;;  %v327_v13 = vmul.f32 %v326_v0, %v280_v5  ;;  %v337_v14 = vmul.f32 %v336_v3, %v280_v5  ;;  %s1259_s19 = sld [smem:[#allocation16 + $0x101]]  ;;  %s1261_s20 = sld [smem:[#allocation17 + $0x3]] }
  0xc3   :  { %v289_v15 = vadd.f32 %v288_v49, %v287_v8  ;;  %v299_v16 = vadd.f32 %v298_v52, %v297_v9  ;;  %v309_v17 = vadd.f32 %v308_v57, %v307_v10  ;;  %v319_v18 = vadd.f32 %v318_v60, %v317_v11  ;;  %s1263_s21 = sld [smem:[#allocation16 + $0x180]]  ;;  %s1265_s2 = sld [smem:[#allocation16 + $0x181]] }
  0xc4   :  { %v283_v19 = vsel %vm281_vm1, %v275_v4, %v282_v12  ;;  %v329_v20 = vadd.f32 %v328_v1, %v327_v13  ;;  %v339_v21 = vadd.f32 %v338_v6, %v337_v14  ;;  %v393_v49 = vstv %s1181_s23  ;;  %s1267_s5 = sld [smem:[#allocation17 + $0x4]]  ;;  %s1269_s22 = sld [smem:[#allocation16 + $0x200]] }
  0xc5   :  { %v292_v22 = vmul.f32 %v291_v50, %v283_v19  ;;  %v302_v23 = vmul.f32 %v301_v55, %v283_v19  ;;  %v312_v24 = vmul.f32 %v311_v58, %v283_v19  ;;  %v322_v25 = vmul.f32 %v321_v63, %v283_v19  ;;  %s1271_s3 = sld [smem:[#allocation16 + $0x201]]  ;;  %s1280_s11 = sld [smem:[#allocation19]] }
  0xc6   :  { %v332_v26 = vmul.f32 %v331_v2, %v283_v19  ;;  %v342_v27 = vmul.f32 %v341_v7, %v283_v19  ;;  %v397_v50 = vstv %s1183_s6  ;;  %v401_v51 = vstv %s1185_s8  ;;  %s1284_s23 = sld [smem:[#allocation20]]  ;;  %s1286_s6 = sld [smem:[#allocation19 + $0x1]] }
  0xc7   :  { %v1159_v28 = vadd.f32 %v292_v22, %v289_v15  ;;  %v1161_v29 = vadd.f32 %v302_v23, %v299_v16  ;;  %v1163_v30 = vadd.f32 %v312_v24, %v309_v17  ;;  %v1165_v31 = vadd.f32 %v322_v25, %v319_v18  ;;  %s1291_s8 = sld [smem:[#allocation19 + $0x2]]  ;;  %s1299_s27 = sld [smem:[#allocation19 + $0x80]] }
  0xc8   :  { %v1167_v32 = vadd.f32 %v332_v26, %v329_v20  ;;  %v1169_v33 = vadd.f32 %v342_v27, %v339_v21  ;;  %v416_v55 = vstv %s1187_s24  ;;  %v419_v56 = vstv %s1191_s28  ;;  %s1297_s24 = sld [smem:[#allocation20 + $0x1]] }
  0xc9   :  { %v345_v34 = vmin.f32 %v1159_v28, 0.0  ;;  %v352_v35 = vmin.f32 %v1161_v29, 0.0  ;;  %v359_v36 = vmin.f32 %v1163_v30, 0.0  ;;  %v366_v37 = vmin.f32 %v1165_v31, 0.0  ;;  %s1302_s28 = sld [smem:[#allocation19 + $0x81]] }
  0xca   :  { %v373_v40 = vmin.f32 %v1167_v32, 0.0  ;;  %v380_v43 = vmin.f32 %v1169_v33, 0.0  ;;  %vm344_vm2 = vcmp.gt.f32.partialorder %v1159_v28, 0.0  ;;  %vm351_vm3 = vcmp.gt.f32.partialorder %v1161_v29, 0.0 }
  0xcb   :  { %v346_v38 = vmul.f32 1.442695, %v345_v34  ;;  %v353_v39 = vmul.f32 1.442695, %v352_v35  ;;  %v360_v41 = vmul.f32 1.442695, %v359_v36  ;;  %v423_v59 = vstv %s1193_s29 }
  0xcc   :  { %v367_v42 = vmul.f32 1.442695, %v366_v37  ;;  %v374_v44 = vmul.f32 1.442695, %v373_v40  ;;  %v381_v45 = vmul.f32 1.442695, %v380_v43  ;;  %v427_v6 = vstv %s1195_s7 }
  0xcd   :  { %701 = vpow2.f32 %v346_v38  ;;  %vm358_vm4 = vcmp.gt.f32.partialorder %v1163_v30, 0.0  ;;  %vm365_vm5 = vcmp.gt.f32.partialorder %v1165_v31, 0.0  ;;  %vm372_vm6 = vcmp.gt.f32.partialorder %v1167_v32, 0.0  ;;  %s1304_s29 = sld [smem:[#allocation19 + $0x82]]  ;;  %s1306_s7 = sld [smem:[#allocation19 + $0x3]] }
  0xce   :  { %703 = vpow2.f32 %v353_v39  ;;  %vm379_vm7 = vcmp.gt.f32.partialorder %v1169_v33, 0.0  ;;  %v405_v20 = vstv %s1202_s9  ;;  %v431_v26 = vstv %s1209_s15  ;;  %s1309_s9 = sld [smem:[#allocation19 + $0x83]]  ;;  %s1315_s15 = sld [smem:[#allocation19 + $0x84]] }
  0xcf   :  { %705 = vpow2.f32 %v360_v41  ;;  %v435_v35 = vstv %s1214_s10  ;;  %s562_s10 = sld [smem:[#allocation22]] }
  0xd0   :  { %707 = vpow2.f32 %v367_v42 }
  0xd1   :  { %709 = vpow2.f32 %v374_v44 }
  0xd2   :  { %711 = vpow2.f32 %v381_v45 }
  0xd7   :  { %v702_v47 = vpop.eup %701 }
  0xd8   :  { %v704_v52 = vpop.eup %703  ;;  %v638_v53 = vadd.f32 -1.0, %v702_v47 }
  0xd9   :  { %v706_v57 = vpop.eup %705  ;;  %v639_v58 = vadd.f32 -1.0, %v704_v52 }
  0xda   :  { %v708_v60 = vpop.eup %707  ;;  %v349_v61 = vmul.f32 1.6732632, %v638_v53  ;;  %v640_v62 = vadd.f32 -1.0, %v706_v57  ;;  %v464_v53 = vstv %s1249_s18  ;;  %s561_s18 = sld [smem:[#allocation23]] }
  0xdb   :  { %v710_v63 = vpop.eup %709  ;;  %v356_v0 = vmul.f32 1.6732632, %v639_v58  ;;  %v641_v1 = vadd.f32 -1.0, %v708_v60  ;;  %v474_v58 = vstv %s1255_s1 }
  0xdc   :  { %v712_v2 = vpop.eup %711  ;;  %v350_v3 = vsel %vm344_vm2, %v1159_v28, %v349_v61  ;;  %v363_v4 = vmul.f32 1.6732632, %v640_v62  ;;  %v642_v5 = vadd.f32 -1.0, %v710_v63  ;;  %v409_v28 = vstv %s1204_s30  ;;  %s1313_s30 = sld [smem:[#allocation19 + $0x4]] }
  0xdd   :  { %v357_v7 = vsel %vm351_vm3, %v1161_v29, %v356_v0  ;;  %v370_v8 = vmul.f32 1.6732632, %v641_v1  ;;  %v643_v9 = vadd.f32 -1.0, %v712_v2  ;;  %v389_v10 = vmul.f32 %v388_v46, %v350_v3 }
  0xde   :  { %v364_v11 = vsel %vm358_vm4, %v1163_v30, %v363_v4  ;;  %v377_v12 = vmul.f32 1.6732632, %v642_v5  ;;  %v394_v13 = vmul.f32 %v393_v49, %v357_v7  ;;  %v415_v14 = vmul.f32 %v414_v54, %v350_v3 }
  0xdf   :  { %v371_v15 = vsel %vm365_vm5, %v1165_v31, %v370_v8  ;;  %v384_v16 = vmul.f32 1.6732632, %v643_v9  ;;  %v391_v17 = vadd.f32 %v390_v48, %v389_v10  ;;  %v398_v18 = vmul.f32 %v397_v50, %v364_v11 }
  0xe0   :  { %v378_v19 = vsel %vm372_vm6, %v1167_v32, %v377_v12  ;;  %v417_v21 = vadd.f32 %v416_v55, %v415_v14  ;;  %v420_v22 = vmul.f32 %v419_v56, %v357_v7  ;;  %v402_v24 = vmul.f32 %v401_v51, %v371_v15 }
  0xe1   :  { %v395_v23 = vadd.f32 %v394_v13, %v391_v17  ;;  %v424_v25 = vmul.f32 %v423_v59, %v364_v11  ;;  %v385_v27 = vsel %vm379_vm7, %v1169_v33, %v384_v16  ;;  %v428_v30 = vmul.f32 %v427_v6, %v371_v15 }
  0xe2   :  { %v421_v29 = vadd.f32 %v420_v22, %v417_v21  ;;  %v406_v34 = vmul.f32 %v405_v20, %v378_v19  ;;  %v432_v37 = vmul.f32 %v431_v26, %v378_v19  ;;  %v410_v38 = vmul.f32 %v409_v28, %v385_v27 }
  0xe3   :  { %v399_v31 = vadd.f32 %v398_v18, %v395_v23  ;;  %v436_v40 = vmul.f32 %v435_v35, %v385_v27  ;;  %v452_v48 = vstv %s1245_s16  ;;  %v454_v49 = vstv %s1243_s12  ;;  %s683_s12 = sld [smem:[#allocation22 + $0x80]]  ;;  %s681_s16 = sld [smem:[#allocation22 + $0x1]] }
  0xe4   :  { %v425_v36 = vadd.f32 %v424_v25, %v421_v29  ;;  %v457_v50 = vstv %s1247_s17  ;;  %v462_v51 = vstv %s1251_s0  ;;  %v467_v54 = vstv %s1253_s13  ;;  %s684_s17 = sld [smem:[#allocation22 + $0x81]]  ;;  %s942_s13 = smov [#allocation25]  }
  0xe5   :  { %v403_v32 = vadd.f32 %v402_v24, %v399_v31  ;;  %v472_v55 = vstv %s1257_s4  ;;  %v477_v59 = vstv %s1259_s19  ;;  %v482_v61 = vstv %s1263_s21  ;;  %s682_s0 = sld [smem:[#allocation23 + $0x1]]  ;;  %s589_s1 = sshll.u32 %s942_s13, 4  ;;  %s590_s1 = int_to_ptr.vmem [resolvable:$true] %s589_s1 }
  0xe6   :  { %v429_v39 = vadd.f32 %v428_v30, %v425_v36  ;;  %v484_v62 = vstv %s1261_s20  ;;  %v487_v63 = vstv %s1265_s2  ;;  %v492_v1 = vstv %s1269_s22  ;;  %s887_s4 = scalar_lea.vmem %s590_s1, 256  ;;  %p892_p13 = scmp.lt.s32.totalorder %s590_s1, %s590_s1 }
  0xe7   :  { %v407_v41 = vadd.f32 %v406_v34, %v403_v32  ;;  %v494_v2 = vstv %s1267_s5  ;;  %v497_v3 = vstv %s1271_s3  ;;  %v517_v22 = vstv %s1280_s11  ;;  %p888_p12 = scmp.ne.s32.totalorder %s590_s1, %s887_s4  ;;  %p893_p0 = scmp.lt.s32.totalorder %s887_s4, %s887_s4 }
  0xe8   :  { %v433_v42 = vadd.f32 %v432_v37, %v429_v39  ;;  %v519_v25 = vstv %s1284_s23  ;;  %v522_v26 = vstv %s1286_s6  ;;  %v526_v30 = vstv %s1291_s8 }
  0xe9   :  { %v411_v43 = vadd.f32 %v410_v38, %v407_v41  ;;  %v539_v35 = vstv %s1299_s27  ;;  %v541_v36 = vstv %s1297_s24  ;;  %v544_v37 = vstv %s1302_s28  ;;  %p894_p1 = por %p893_p0, %p892_p13 }
  0xea   :  { %v437_v44 = vadd.f32 %v436_v40, %v433_v42 }
  0xeb   :  { %v439_v45 = vmin.f32 %v411_v43, 0.0  ;;  %vm438_vm8 = vcmp.gt.f32.partialorder %v411_v43, 0.0  ;;  %p895_p2 = pnand %p894_p1, %p888_p12 }
  0xec   :  { %v445_v46 = vmin.f32 %v437_v44, 0.0  ;;  %vm444_vm9 = vcmp.gt.f32.partialorder %v437_v44, 0.0 }
  0xed   :  { %v440_v47 = vmul.f32 1.442695, %v439_v45  ;;  %v530_v45 = vstv %s1306_s7 }
  0xee   :  { %v446_v33 = vmul.f32 1.442695, %v445_v46 }
  0xef   :  { %713 = vpow2.f32 %v440_v47 }
  0xf0   :  { %715 = vpow2.f32 %v446_v33 }
  0xf9   :  { %v714_v52 = vpop.eup %713 }
  0xfa   :  { %v716_v56 = vpop.eup %715  ;;  %v656_v57 = vadd.f32 -1.0, %v714_v52 }
  0xfb   :  { %v657_v60 = vadd.f32 -1.0, %v716_v56  ;;  %v556_v56 = vstv %s1315_s15 }
  0xfc   :  { %v443_v0 = vsel %vm438_vm8, %v411_v43, %v656_v57  ;;  %v548_v43 = vstv %s1304_s29 }
  0xfd   :  { %v449_v4 = vsel %vm444_vm9, %v437_v44, %v657_v60  ;;  %v453_v5 = vmul.f32 %v452_v48, %v443_v0  ;;  %v463_v6 = vmul.f32 %v462_v51, %v443_v0  ;;  %v473_v7 = vmul.f32 %v472_v55, %v443_v0 }
  0xfe   :  { %v458_v8 = vmul.f32 %v457_v50, %v449_v4  ;;  %v468_v9 = vmul.f32 %v467_v54, %v449_v4  ;;  %v478_v10 = vmul.f32 %v477_v59, %v449_v4  ;;  %v483_v11 = vmul.f32 %v482_v61, %v443_v0 }
  0xff   :  { %v455_v12 = vadd.f32 %v454_v49, %v453_v5  ;;  %v465_v13 = vadd.f32 %v464_v53, %v463_v6  ;;  %v475_v14 = vadd.f32 %v474_v58, %v473_v7  ;;  %v488_v15 = vmul.f32 %v487_v63, %v449_v4 }
 0x100   :  { %v485_v16 = vadd.f32 %v484_v62, %v483_v11  ;;  %v493_v17 = vmul.f32 %v492_v1, %v443_v0  ;;  %v498_v18 = vmul.f32 %v497_v3, %v449_v4  ;;  %v552_v49 = vstv %s1309_s9 }
 0x101   :  { %v459_v19 = vadd.f32 %v458_v8, %v455_v12  ;;  %v469_v20 = vadd.f32 %v468_v9, %v465_v13  ;;  %v479_v21 = vadd.f32 %v478_v10, %v475_v14  ;;  %v534_v51 = vstv %s1313_s30 }
 0x102   :  { %v489_v23 = vadd.f32 %v488_v15, %v485_v16  ;;  %v495_v24 = vadd.f32 %v494_v2, %v493_v17  ;;  %v563_v3 = vstv %s562_s10  ;;  %v573_v4 = vstv %s683_s12 }
 0x103   :  { %v500_v27 = vand.u32 2147483647, %v459_v19  ;;  %v503_v28 = vand.u32 2147483647, %v469_v20  ;;  %v506_v29 = vand.u32 2147483647, %v479_v21  ;;  %v568_v5 = vstv %s681_s16 }
 0x104   :  { %v499_v31 = vadd.f32 %v498_v18, %v495_v24  ;;  %v509_v34 = vand.u32 2147483647, %v489_v23  ;;  %v578_v6 = vstv %s684_s17  ;;  %v565_v8 = vstv %s561_s18 }
 0x105   :  { %vm501_vm10 = vcmp.gt.f32.partialorder %v500_v27, 0.5  ;;  %vm504_vm11 = vcmp.gt.f32.partialorder %v503_v28, 0.5  ;;  %vm507_vm12 = vcmp.gt.f32.partialorder %v506_v29, 0.5  ;;  %v575_v9 = vstv %s682_s0 }
 0x106   :  { %v502_v32 = vsel %vm501_vm10, %v459_v19, 0.0  ;;  %v505_v38 = vsel %vm504_vm11, %v469_v20, 0.0  ;;  %v508_v39 = vsel %vm507_vm12, %v479_v21, 0.0  ;;  %vm510_vm13 = vcmp.gt.f32.partialorder %v509_v34, 0.5 }
 0x107   :  { %v512_v40 = vand.u32 2147483647, %v499_v31  ;;  %v518_v41 = vmul.f32 %v517_v22, %v502_v32  ;;  %v523_v42 = vmul.f32 %v522_v26, %v505_v38  ;;  %v511_v44 = vsel %vm510_vm13, %v489_v23, 0.0 }
 0x108   :  { %v540_v46 = vmul.f32 %v539_v35, %v502_v32  ;;  %v545_v47 = vmul.f32 %v544_v37, %v505_v38  ;;  %v527_v48 = vmul.f32 %v526_v30, %v508_v39  ;;  %v549_v53 = vmul.f32 %v548_v43, %v508_v39 }
 0x109   :  { %vm513_vm14 = vcmp.gt.f32.partialorder %v512_v40, 0.5  ;;  %v520_v33 = vadd.f32 %v519_v25, %v518_v41  ;;  %v531_v55 = vmul.f32 %v530_v45, %v511_v44  ;;  %v553_v58 = vmul.f32 %v552_v49, %v511_v44 }
 0x10a   :  { %v514_v50 = vsel %vm513_vm14, %v499_v31, 0.0  ;;  %v542_v52 = vadd.f32 %v541_v36, %v540_v46 }
 0x10b   :  { %v524_v54 = vadd.f32 %v523_v42, %v520_v33  ;;  %v535_v60 = vmul.f32 %v534_v51, %v514_v50  ;;  %v557_v62 = vmul.f32 %v556_v56, %v514_v50 }
 0x10c   :  { %v546_v57 = vadd.f32 %v545_v47, %v542_v52 }
 0x10d   :  { %v528_v59 = vadd.f32 %v527_v48, %v524_v54 }
 0x10e   :  { %v550_v61 = vadd.f32 %v549_v53, %v546_v57 }
 0x10f   :  { %v532_v63 = vadd.f32 %v531_v55, %v528_v59 }
 0x110   :  { %v554_v0 = vadd.f32 %v553_v58, %v550_v61 }
 0x111   :  { %v536_v1 = vadd.f32 %v535_v60, %v532_v63 }
 0x112   :  { %v558_v2 = vadd.f32 %v557_v62, %v554_v0 }
 0x113   :  { %717 = vtanh.f32 %v536_v1 }
 0x114   :  { %719 = vtanh.f32 %v558_v2 }
 0x11d   :  { %v718_v7 = vpop.eup %717 }
 0x11e   :  { %v720_v10 = vpop.eup %719  ;;  %v564_v11 = vmul.f32 %v718_v7, %v563_v3  ;;  %v574_v12 = vmul.f32 %v718_v7, %v573_v4 }
 0x11f   :  { %v569_v13 = vmul.f32 %v720_v10, %v568_v5  ;;  %v579_v14 = vmul.f32 %v720_v10, %v578_v6 }
 0x120   :  { %v566_v15 = vadd.f32 %v565_v8, %v564_v11  ;;  %v576_v16 = vadd.f32 %v575_v9, %v574_v12 }
 0x122   :  { %v570_v17 = vadd.f32 %v569_v13, %v566_v15  ;;  %v580_v18 = vadd.f32 %v579_v14, %v576_v16 }
 0x124   :  { %581 = vst [vmem:[#allocation25] sm:$0xff] %v570_v17  ;;  %583 = vst [vmem:[#allocation25 + $0x8] sm:$0xff] %v580_v18 }
 0x125   :  { %898 = shalt.err (!%p895_p2)
}
 0x126   :  { %s899_s21 = scalar_lea.hbm %s1355_s14, 256 }
 0x127   :  { %p900_p3 = scmp.ne.s32.totalorder %s1355_s14, %s899_s21  ;;  %p903_p4 = scmp.lt.u32.totalorder %s899_s21, %s1355_s14 }
 0x129   :  { %p905_p5 = pnand %p903_p4, %p900_p3 }
 0x12b   :  { %908 = shalt.err (!%p905_p5)
}
 0x12c   :  { %595 = dma.vmem_to_hbm [thread:$0]  %s590_s1, 256, %s1355_s14, [#allocation5], %s933_s25, %s933_s25, %s934_s26  }
 0x12d   :  { %925 = dma.done.wait [#allocation5], 256  }
 0x12e   :  { %926 = vsyncadd [#allocation5], 4294967040 }
 0x12f   :  { %599 = vsyncpa [#allocation4], 1 }
 0x130   :  { %600 = vsyncpa [#allocation5], 1 }
 0x131   :  { %601 = vsyncpa [#allocation6], 1 }
 0x132   :  { %602 = vsyncpa [#allocation9], 1 }
 0x133   :  { %603 = vsyncpa [#allocation12], 1 }
 0x134   :  { %604 = vsyncpa [#allocation15], 1 }
 0x135   :  { %605 = vsyncpa [#allocation18], 1 }
 0x136   :  { %606 = vsyncpa [#allocation21], 1 }
 0x137   :  { %607 = vsyncpa [#allocation24], 1 }

</bundles_post_ra>
